<compile_context>
chip_gen: v5e
topology: v5e:2x2
jax: 0.10.0
libtpu: 0.0.40
codegen_flags: <defaults>
</compile_context>

<pallas_src>
import jax
import jax.numpy as jnp
from jax.experimental import pallas as pl
from jax.experimental.pallas import tpu as pltpu

_NEG_BIG = -1e30   # plain Python float: folded as a literal, NOT a captured const


def _elu(x):
    return jnp.where(x > 0, x, jnp.exp(x) - 1.0)


def _build_gat_kernel(cfgs):
    """Builds a single fused kernel for a fixed stack of GATConv layers.

    `cfgs` is a list of static per-layer configs:
      N_src, N_dst, H, F, shared_fc, res_mode ('none'|'identity'|'linear'),
      inner_elu, is_last, negative_slope.
    Kernel ref order: x, then per layer [adj, w_src, (w_dst), attn_l, attn_r,
    (w_res)], then outputs [h_out, attn_0, ..., attn_{L-1}].
    """
    n_layers = len(cfgs)

    def kernel(*refs):
        it = iter(refs)
        x_ref = next(it)
        layer_in = []
        for cfg in cfgs:
            d = {"adj": next(it), "w_src": next(it)}
            if not cfg["shared_fc"]:
                d["w_dst"] = next(it)
            d["al"] = next(it)
            d["ar"] = next(it)
            if cfg["res_mode"] == "linear":
                d["w_res"] = next(it)
            layer_in.append(d)
        h_out_ref = next(it)
        attn_refs = [next(it) for _ in range(n_layers)]

        h = x_ref[...]                                   # (N_src0, d_in0) f32
        for l, cfg in enumerate(cfgs):
            r = layer_in[l]
            N_dst, H, F = cfg["N_dst"], cfg["H"], cfg["F"]
            slope = cfg["negative_slope"]

            h_dst = h[:N_dst]                            # DGL block: dst = first rows

            # --- head-fused projections: one MXU matmul with N = H*F -------
            feat_src = jnp.dot(h.astype(jnp.bfloat16), r["w_src"][...],
                               preferred_element_type=jnp.float32)      # (N_src, H*F)
            if cfg["shared_fc"]:
                feat_dst = feat_src[:N_dst]              # skip redundant matmul
            else:
                feat_dst = jnp.dot(h_dst.astype(jnp.bfloat16), r["w_dst"][...],
                                   preferred_element_type=jnp.float32)  # (N_dst, H*F)

            al = r["al"][...]                            # (1, H*F) f32
            ar = r["ar"][...]                            # (1, H*F) f32
            mask = r["adj"][...] != 0                    # (N_dst, N_src) from int8

            # --- residual term ---------------------------------------------
            if cfg["res_mode"] == "linear":
                res = jnp.dot(h_dst.astype(jnp.bfloat16), r["w_res"][...],
                              preferred_element_type=jnp.float32)        # (N_dst, H*F)
            elif cfg["res_mode"] == "identity":
                res = h_dst                              # d_in == H*F
            else:
                res = None

            # --- per-head attention + aggregation (unrolled, tiny H) --------
            head_outs = []
            for hh in range(H):
                cols = slice(hh * F, (hh + 1) * F)
                fs = feat_src[:, cols]                   # (N_src, F)
                fd = feat_dst[:, cols]                   # (N_dst, F)
                # logits via VPU reductions (no full feat_src transpose)
                el = jnp.sum(fs * al[:, cols], axis=-1, keepdims=True)   # (N_src, 1)
                er = jnp.sum(fd * ar[:, cols], axis=-1, keepdims=True)   # (N_dst, 1)
                e = er + el.T                                            # (N_dst, N_src)
                e = jnp.where(e > 0, e, slope * e)                       # LeakyReLU
                e = jnp.where(mask, e, _NEG_BIG)
                m = jnp.max(e, axis=-1, keepdims=True)
                p = jnp.where(mask, jnp.exp(e - m), 0.0)
                denom = jnp.maximum(jnp.sum(p, axis=-1, keepdims=True), 1e-20)
                a = p * pl.reciprocal(denom, approx=True)                # edge softmax
                attn_refs[l][hh] = a.astype(attn_refs[l].dtype)
                head_outs.append(
                    jnp.dot(a.astype(jnp.bfloat16), fs.astype(jnp.bfloat16),
                            preferred_element_type=jnp.float32))         # (N_dst, F)

            rst = head_outs[0] if H == 1 else jnp.concatenate(head_outs, axis=-1)
            if res is not None:
                rst = rst + res                          # DGL: residual before activation
            if cfg["inner_elu"]:
                rst = _elu(rst)                          # GATConv's own activation

            if not cfg["is_last"]:
                h = _elu(rst)                            # .flatten(1) is a no-op here
            else:
                out = rst[:, 0:F]                        # .mean(1) over heads
                for hh in range(1, H):
                    out = out + rst[:, hh * F:(hh + 1) * F]
                if H > 1:
                    out = out * (1.0 / H)
                h_out_ref[...] = out.astype(h_out_ref.dtype)

    return kernel


def gat_forward(params, x, adjs, heads, num_hidden, num_classes, negative_slope=0.2):
    """Reproduces GAT.forward(blocks, inputs) -> (h, elist) in one pallas_call."""
    n_layers = len(adjs)
    cfgs = []
    inputs = [x.astype(jnp.float32)]

    def fuse_w(w):       # (H, d_in, F) -> (d_in, H*F), head-interleaved, bf16
        H, d, F = w.shape
        return jnp.transpose(w, (1, 0, 2)).reshape(d, H * F).astype(jnp.bfloat16)

    def fuse_a(a):       # (H, 1, F) -> (1, H*F), f32 (used on the VPU)
        H, _, F = a.shape
        return jnp.transpose(a, (1, 0, 2)).reshape(1, H * F).astype(jnp.float32)

    for l in range(n_layers):
        p, adj, H = params[l], adjs[l], heads[l]
        F = num_classes if l == n_layers - 1 else num_hidden
        N_dst, N_src = adj.shape
        shared_fc = p["w_dst"] is p["w_src"]
        if p.get("w_res") is not None:
            res_mode = "linear"
        elif p.get("residual_identity", False):
            res_mode = "identity"
        else:
            res_mode = "none"
        cfgs.append(dict(N_src=N_src, N_dst=N_dst, H=H, F=F, shared_fc=shared_fc,
                         res_mode=res_mode, inner_elu=p["inner_elu"],
                         is_last=(l == n_layers - 1),
                         negative_slope=float(negative_slope)))
        inputs.append(adj.astype(jnp.int8))              # compact adjacency mask
        inputs.append(fuse_w(p["w_src"]))
        if not shared_fc:
            inputs.append(fuse_w(p["w_dst"]))
        inputs.append(fuse_a(p["attn_l"]))
        inputs.append(fuse_a(p["attn_r"]))
        if res_mode == "linear":
            inputs.append(p["w_res"].astype(jnp.bfloat16))   # already (d_in, H*F)

    out_shapes = [jax.ShapeDtypeStruct((adjs[-1].shape[0], num_classes), jnp.float32)]
    for l in range(n_layers):
        out_shapes.append(
            jax.ShapeDtypeStruct((heads[l],) + tuple(adjs[l].shape), jnp.float32))

    vmem = pl.BlockSpec(memory_space=pltpu.MemorySpace.VMEM)
    outs = pl.pallas_call(
        _build_gat_kernel(cfgs),
        out_shape=tuple(out_shapes),
        in_specs=[vmem] * len(inputs),
        out_specs=tuple([vmem] * len(out_shapes)),
    )(*inputs)
    return outs[0], list(outs[1:])


# --- pure-JAX f32 reference (for correctness check only) ----------------------
def gat_forward_ref(params, x, adjs, heads, num_hidden, num_classes, negative_slope=0.2):
    h = x
    elist = []
    L = len(adjs)
    for l in range(L):
        adj = adjs[l]
        N_dst = adj.shape[0]
        p = params[l]
        H = heads[l]
        F = num_classes if l == L - 1 else num_hidden
        h_dst = h[:N_dst]
        feat_src = jnp.einsum("nd,hdf->nhf", h, p["w_src"])
        feat_dst = jnp.einsum("nd,hdf->nhf", h_dst, p["w_dst"])
        el = jnp.einsum("nhf,hf->hn", feat_src, p["attn_l"][:, 0, :])   # (H, N_src)
        er = jnp.einsum("nhf,hf->hn", feat_dst, p["attn_r"][:, 0, :])   # (H, N_dst)
        e = er[:, :, None] + el[:, None, :]                              # (H, N_dst, N_src)
        e = jnp.where(e > 0, e, negative_slope * e)
        mask = (adj != 0)[None]
        e = jnp.where(mask, e, -1e30)
        a = jax.nn.softmax(e, axis=-1)
        a = jnp.where(mask, a, 0.0)
        rst = jnp.einsum("hji,ihf->jhf", a, feat_src)                    # (N_dst, H, F)
        if p["w_res"] is not None:
            rst = rst + (h_dst @ p["w_res"]).reshape(N_dst, H, F)
        elif p["residual_identity"]:
            rst = rst + h_dst.reshape(N_dst, H, F)
        if p["inner_elu"]:
            rst = jax.nn.elu(rst)
        elist.append(a)
        if l != L - 1:
            h = jax.nn.elu(rst.reshape(N_dst, H * F))
        else:
            h = rst.mean(axis=1)
    return h, elist


if __name__ == "__main__":
    key = jax.random.PRNGKey(0)

    # Model hyperparameters (small, consistent with the module's __init__).
    num_layers = 2
    in_dim, num_hidden, num_classes = 8, 16, 4
    heads = [2, 2, 1]                 # len == num_layers + 1
    node_counts = [32, 24, 16, 8]     # src/dst node counts of the 3 sampled blocks

    k_feat, k_adj, k_par = jax.random.split(key, 3)
    x = jax.random.normal(k_feat, (node_counts[0], in_dim), dtype=jnp.float32)

    # Synthetic bipartite blocks: dense adjacency masks, self-edges guaranteed
    # (in DGL blocks the first N_dst source nodes are the destination nodes).
    adjs = []
    ak = jax.random.split(k_adj, num_layers + 1)
    for l in range(num_layers + 1):
        n_src, n_dst = node_counts[l], node_counts[l + 1]
        a = (jax.random.uniform(ak[l], (n_dst, n_src)) < 0.3).astype(jnp.float32)
        adjs.append(jnp.maximum(a, jnp.eye(n_dst, n_src, dtype=jnp.float32)))

    # Deterministic parameter init (Xavier-normal).
    pk = jax.random.split(k_par, 12)

    def xavier(k, shape):
        fan_in, fan_out = shape[-2], shape[-1]
        std = (2.0 / (fan_in + fan_out)) ** 0.5
        return (std * jax.random.normal(k, shape)).astype(jnp.float32)

    H0, H1, H2 = heads
    params = [
        # Layer 0: GATConv((in_dim, in_dim), num_hidden, H0), no residual, no inner act.
        dict(w_src=xavier(pk[0], (H0, in_dim, num_hidden)),
             w_dst=xavier(pk[1], (H0, in_dim, num_hidden)),
             attn_l=xavier(pk[2], (H0, 1, num_hidden)),
             attn_r=xavier(pk[3], (H0, 1, num_hidden)),
             w_res=None, residual_identity=False, inner_elu=False),
    ]
    # Layer 1: GATConv(num_hidden*H0, num_hidden, H1, residual=True, activation=ELU).
    # Single shared fc for src and dst; residual is Identity (dims match).
    w1 = xavier(pk[4], (H1, num_hidden * H0, num_hidden))
    params.append(
        dict(w_src=w1, w_dst=w1,
             attn_l=xavier(pk[5], (H1, 1, num_hidden)),
             attn_r=xavier(pk[6], (H1, 1, num_hidden)),
             w_res=None, residual_identity=True, inner_elu=True))
    # Final layer: GATConv((num_hidden*H1, num_hidden*H1), num_classes, H2,
    # residual=True -> Linear res_fc, activation=None).
    params.append(
        dict(w_src=xavier(pk[7], (H2, num_hidden * H1, num_classes)),
             w_dst=xavier(pk[8], (H2, num_hidden * H1, num_classes)),
             attn_l=xavier(pk[9], (H2, 1, num_classes)),
             attn_r=xavier(pk[10], (H2, 1, num_classes)),
             w_res=xavier(pk[11], (num_hidden * H1, H2 * num_classes)),
             residual_identity=False, inner_elu=False))

    h, elist = gat_forward(params, x, adjs, heads, num_hidden, num_classes)
    h = jax.block_until_ready(h)
    for e in elist:
        jax.block_until_ready(e)

    assert h.shape == (node_counts[-1], num_classes)
    assert elist[0].shape == (H0, node_counts[1], node_counts[0])
    assert elist[1].shape == (H1, node_counts[2], node_counts[1])
    assert elist[2].shape == (H2, node_counts[3], node_counts[2])
    assert bool(jnp.all(jnp.isfinite(h)))

    # Numerical check vs. a pure-JAX f32 reference (loose tolerance: kernel
    # matmuls run in bf16 with f32 accumulation).
    h_ref, elist_ref = gat_forward_ref(params, x, adjs, heads, num_hidden, num_classes)
    assert bool(jnp.allclose(h, h_ref, rtol=1e-1, atol=1e-1)), \
        float(jnp.max(jnp.abs(h - h_ref)))
    for a_k, a_r in zip(elist, elist_ref):
        assert bool(jnp.allclose(a_k, a_r, rtol=5e-2, atol=5e-2))

    print("KERNEL_OK")
</pallas_src>

<mosaic_0001>
module attributes {stable_mosaic.version = 11 : i64} {
  func.func @kernel(%arg0: memref<32x8xf32, #tpu.memory_space<vmem>>, %arg1: memref<24x32xi8, #tpu.memory_space<vmem>>, %arg2: memref<8x32xbf16, #tpu.memory_space<vmem>>, %arg3: memref<8x32xbf16, #tpu.memory_space<vmem>>, %arg4: memref<1x32xf32, #tpu.memory_space<vmem>>, %arg5: memref<1x32xf32, #tpu.memory_space<vmem>>, %arg6: memref<16x24xi8, #tpu.memory_space<vmem>>, %arg7: memref<32x32xbf16, #tpu.memory_space<vmem>>, %arg8: memref<1x32xf32, #tpu.memory_space<vmem>>, %arg9: memref<1x32xf32, #tpu.memory_space<vmem>>, %arg10: memref<8x16xi8, #tpu.memory_space<vmem>>, %arg11: memref<32x4xbf16, #tpu.memory_space<vmem>>, %arg12: memref<32x4xbf16, #tpu.memory_space<vmem>>, %arg13: memref<1x4xf32, #tpu.memory_space<vmem>>, %arg14: memref<1x4xf32, #tpu.memory_space<vmem>>, %arg15: memref<32x4xbf16, #tpu.memory_space<vmem>>, %arg16: memref<8x4xf32, #tpu.memory_space<vmem>>, %arg17: memref<2x24x32xf32, #tpu.memory_space<vmem>>, %arg18: memref<2x16x24xf32, #tpu.memory_space<vmem>>, %arg19: memref<1x8x16xf32, #tpu.memory_space<vmem>>) attributes {dimension_semantics = [], scalar_prefetch = 0 : i64, scratch_operands = 0 : i64, tpu.core_type = #tpu.core_type<tc>} {
    %c0 = arith.constant 0 : index
    %c0_0 = arith.constant 0 : index
    %0 = vector.load %arg0[%c0, %c0_0] : memref<32x8xf32, #tpu.memory_space<vmem>>, vector<32x8xf32>
    %1 = vector.extract_strided_slice %0 {offsets = [0, 0], sizes = [24, 8], strides = [1, 1]} : vector<32x8xf32> to vector<24x8xf32>
    %2 = arith.truncf %0 : vector<32x8xf32> to vector<32x8xbf16>
    %c0_1 = arith.constant 0 : index
    %c0_2 = arith.constant 0 : index
    %3 = vector.load %arg2[%c0_1, %c0_2] : memref<8x32xbf16, #tpu.memory_space<vmem>>, vector<8x32xbf16>
    %cst = arith.constant dense<0.000000e+00> : vector<32x32xf32>
    %4 = tpu.matmul %2, %3, %cst {dimension_numbers = #tpu.dot_dimension_numbers<[1], [0], [0], [1], [0, 0, 1, 1], [], []>} : vector<32x8xbf16>, vector<8x32xbf16>, vector<32x32xf32> -> vector<32x32xf32>
    %5 = arith.truncf %1 : vector<24x8xf32> to vector<24x8xbf16>
    %c0_3 = arith.constant 0 : index
    %c0_4 = arith.constant 0 : index
    %6 = vector.load %arg3[%c0_3, %c0_4] : memref<8x32xbf16, #tpu.memory_space<vmem>>, vector<8x32xbf16>
    %cst_5 = arith.constant dense<0.000000e+00> : vector<24x32xf32>
    %7 = tpu.matmul %5, %6, %cst_5 {dimension_numbers = #tpu.dot_dimension_numbers<[1], [0], [0], [1], [0, 0, 1, 1], [], []>} : vector<24x8xbf16>, vector<8x32xbf16>, vector<24x32xf32> -> vector<24x32xf32>
    %c0_6 = arith.constant 0 : index
    %c0_7 = arith.constant 0 : index
    %8 = vector.load %arg4[%c0_6, %c0_7] : memref<1x32xf32, #tpu.memory_space<vmem>>, vector<1x32xf32>
    %c0_8 = arith.constant 0 : index
    %c0_9 = arith.constant 0 : index
    %9 = vector.load %arg5[%c0_8, %c0_9] : memref<1x32xf32, #tpu.memory_space<vmem>>, vector<1x32xf32>
    %c0_10 = arith.constant 0 : index
    %c0_11 = arith.constant 0 : index
    %10 = vector.load %arg1[%c0_10, %c0_11] : memref<24x32xi8, #tpu.memory_space<vmem>>, vector<24x32xi8>
    %c0_i8 = arith.constant 0 : i8
    %11 = vector.broadcast %c0_i8 : i8 to vector<24x32xi8>
    %12 = arith.cmpi ne, %10, %11 : vector<24x32xi8>
    %13 = vector.extract_strided_slice %4 {offsets = [0, 0], sizes = [32, 16], strides = [1, 1]} : vector<32x32xf32> to vector<32x16xf32>
    %14 = vector.extract_strided_slice %7 {offsets = [0, 0], sizes = [24, 16], strides = [1, 1]} : vector<24x32xf32> to vector<24x16xf32>
    %15 = vector.extract_strided_slice %8 {offsets = [0, 0], sizes = [1, 16], strides = [1, 1]} : vector<1x32xf32> to vector<1x16xf32>
    %16 = vector.broadcast %15 : vector<1x16xf32> to vector<32x16xf32>
    %17 = arith.mulf %13, %16 : vector<32x16xf32>
    %cst_12 = arith.constant dense<0.000000e+00> : vector<32xf32>
    %18 = vector.multi_reduction <add>, %17, %cst_12 [1] : vector<32x16xf32> to vector<32xf32>
    %19 = vector.shape_cast %18 : vector<32xf32> to vector<32x1xf32>
    %20 = vector.extract_strided_slice %9 {offsets = [0, 0], sizes = [1, 16], strides = [1, 1]} : vector<1x32xf32> to vector<1x16xf32>
    %21 = vector.broadcast %20 : vector<1x16xf32> to vector<24x16xf32>
    %22 = arith.mulf %14, %21 : vector<24x16xf32>
    %cst_13 = arith.constant dense<0.000000e+00> : vector<24xf32>
    %23 = vector.multi_reduction <add>, %22, %cst_13 [1] : vector<24x16xf32> to vector<24xf32>
    %24 = vector.shape_cast %23 : vector<24xf32> to vector<24x1xf32>
    %25 = tpu.transpose %19, [1, 0] : vector<32x1xf32> -> vector<1x32xf32>
    %26 = vector.broadcast %24 : vector<24x1xf32> to vector<24x32xf32>
    %27 = vector.broadcast %25 : vector<1x32xf32> to vector<24x32xf32>
    %28 = arith.addf %26, %27 : vector<24x32xf32>
    %cst_14 = arith.constant 0.000000e+00 : f32
    %29 = vector.broadcast %cst_14 : f32 to vector<24x32xf32>
    %30 = arith.cmpf ogt, %28, %29 : vector<24x32xf32>
    %cst_15 = arith.constant 2.000000e-01 : f32
    %31 = vector.broadcast %cst_15 : f32 to vector<24x32xf32>
    %32 = arith.mulf %31, %28 : vector<24x32xf32>
    %33 = arith.select %30, %28, %32 : vector<24x32xi1>, vector<24x32xf32>
    %cst_16 = arith.constant -1.000000e+30 : f32
    %34 = vector.broadcast %cst_16 : f32 to vector<24x32xf32>
    %35 = arith.select %12, %33, %34 : vector<24x32xi1>, vector<24x32xf32>
    %cst_17 = arith.constant dense<0xFF800000> : vector<24xf32>
    %36 = vector.multi_reduction <maximumf>, %35, %cst_17 [1] : vector<24x32xf32> to vector<24xf32>
    %37 = vector.shape_cast %36 : vector<24xf32> to vector<24x1xf32>
    %38 = vector.broadcast %37 : vector<24x1xf32> to vector<24x32xf32>
    %39 = arith.subf %35, %38 : vector<24x32xf32>
    %40 = math.exp %39 : vector<24x32xf32>
    %cst_18 = arith.constant 0.000000e+00 : f32
    %41 = vector.broadcast %cst_18 : f32 to vector<24x32xf32>
    %42 = arith.select %12, %40, %41 : vector<24x32xi1>, vector<24x32xf32>
    %cst_19 = arith.constant dense<0.000000e+00> : vector<24xf32>
    %43 = vector.multi_reduction <add>, %42, %cst_19 [1] : vector<24x32xf32> to vector<24xf32>
    %44 = vector.shape_cast %43 : vector<24xf32> to vector<24x1xf32>
    %cst_20 = arith.constant 9.99999968E-21 : f32
    %45 = vector.broadcast %cst_20 : f32 to vector<24x1xf32>
    %46 = arith.maximumf %44, %45 : vector<24x1xf32>
    %47 = tpu.reciprocal %46 {approx = true} : vector<24x1xf32> -> vector<24x1xf32>
    %48 = vector.broadcast %47 : vector<24x1xf32> to vector<24x32xf32>
    %49 = arith.mulf %42, %48 : vector<24x32xf32>
    %c0_21 = arith.constant 0 : index
    %c0_22 = arith.constant 0 : index
    %c0_23 = arith.constant 0 : index
    %50 = vector.load %arg17[%c0_21, %c0_22, %c0_23] : memref<2x24x32xf32, #tpu.memory_space<vmem>>, vector<1x24x32xf32>
    %51 = vector.shape_cast %50 : vector<1x24x32xf32> to vector<24x32xf32>
    %52 = vector.shape_cast %49 : vector<24x32xf32> to vector<1x24x32xf32>
    tpu.vector_store %arg17[%c0_21, %c0_22, %c0_23], %52 {strides = array<i32>} : memref<2x24x32xf32, #tpu.memory_space<vmem>>, vector<1x24x32xf32>,
    %53 = arith.truncf %49 : vector<24x32xf32> to vector<24x32xbf16>
    %54 = arith.truncf %13 : vector<32x16xf32> to vector<32x16xbf16>
    %cst_24 = arith.constant dense<0.000000e+00> : vector<24x16xf32>
    %55 = tpu.matmul %53, %54, %cst_24 {dimension_numbers = #tpu.dot_dimension_numbers<[1], [0], [0], [1], [0, 0, 1, 1], [], []>} : vector<24x32xbf16>, vector<32x16xbf16>, vector<24x16xf32> -> vector<24x16xf32>
    %56 = vector.extract_strided_slice %4 {offsets = [0, 16], sizes = [32, 16], strides = [1, 1]} : vector<32x32xf32> to vector<32x16xf32>
    %57 = vector.extract_strided_slice %7 {offsets = [0, 16], sizes = [24, 16], strides = [1, 1]} : vector<24x32xf32> to vector<24x16xf32>
    %58 = vector.extract_strided_slice %8 {offsets = [0, 16], sizes = [1, 16], strides = [1, 1]} : vector<1x32xf32> to vector<1x16xf32>
    %59 = vector.broadcast %58 : vector<1x16xf32> to vector<32x16xf32>
    %60 = arith.mulf %56, %59 : vector<32x16xf32>
    %cst_25 = arith.constant dense<0.000000e+00> : vector<32xf32>
    %61 = vector.multi_reduction <add>, %60, %cst_25 [1] : vector<32x16xf32> to vector<32xf32>
    %62 = vector.shape_cast %61 : vector<32xf32> to vector<32x1xf32>
    %63 = vector.extract_strided_slice %9 {offsets = [0, 16], sizes = [1, 16], strides = [1, 1]} : vector<1x32xf32> to vector<1x16xf32>
    %64 = vector.broadcast %63 : vector<1x16xf32> to vector<24x16xf32>
    %65 = arith.mulf %57, %64 : vector<24x16xf32>
    %cst_26 = arith.constant dense<0.000000e+00> : vector<24xf32>
    %66 = vector.multi_reduction <add>, %65, %cst_26 [1] : vector<24x16xf32> to vector<24xf32>
    %67 = vector.shape_cast %66 : vector<24xf32> to vector<24x1xf32>
    %68 = tpu.transpose %62, [1, 0] : vector<32x1xf32> -> vector<1x32xf32>
    %69 = vector.broadcast %67 : vector<24x1xf32> to vector<24x32xf32>
    %70 = vector.broadcast %68 : vector<1x32xf32> to vector<24x32xf32>
    %71 = arith.addf %69, %70 : vector<24x32xf32>
    %cst_27 = arith.constant 0.000000e+00 : f32
    %72 = vector.broadcast %cst_27 : f32 to vector<24x32xf32>
    %73 = arith.cmpf ogt, %71, %72 : vector<24x32xf32>
    %cst_28 = arith.constant 2.000000e-01 : f32
    %74 = vector.broadcast %cst_28 : f32 to vector<24x32xf32>
    %75 = arith.mulf %74, %71 : vector<24x32xf32>
    %76 = arith.select %73, %71, %75 : vector<24x32xi1>, vector<24x32xf32>
    %cst_29 = arith.constant -1.000000e+30 : f32
    %77 = vector.broadcast %cst_29 : f32 to vector<24x32xf32>
    %78 = arith.select %12, %76, %77 : vector<24x32xi1>, vector<24x32xf32>
    %cst_30 = arith.constant dense<0xFF800000> : vector<24xf32>
    %79 = vector.multi_reduction <maximumf>, %78, %cst_30 [1] : vector<24x32xf32> to vector<24xf32>
    %80 = vector.shape_cast %79 : vector<24xf32> to vector<24x1xf32>
    %81 = vector.broadcast %80 : vector<24x1xf32> to vector<24x32xf32>
    %82 = arith.subf %78, %81 : vector<24x32xf32>
    %83 = math.exp %82 : vector<24x32xf32>
    %cst_31 = arith.constant 0.000000e+00 : f32
    %84 = vector.broadcast %cst_31 : f32 to vector<24x32xf32>
    %85 = arith.select %12, %83, %84 : vector<24x32xi1>, vector<24x32xf32>
    %cst_32 = arith.constant dense<0.000000e+00> : vector<24xf32>
    %86 = vector.multi_reduction <add>, %85, %cst_32 [1] : vector<24x32xf32> to vector<24xf32>
    %87 = vector.shape_cast %86 : vector<24xf32> to vector<24x1xf32>
    %cst_33 = arith.constant 9.99999968E-21 : f32
    %88 = vector.broadcast %cst_33 : f32 to vector<24x1xf32>
    %89 = arith.maximumf %87, %88 : vector<24x1xf32>
    %90 = tpu.reciprocal %89 {approx = true} : vector<24x1xf32> -> vector<24x1xf32>
    %91 = vector.broadcast %90 : vector<24x1xf32> to vector<24x32xf32>
    %92 = arith.mulf %85, %91 : vector<24x32xf32>
    %c1 = arith.constant 1 : index
    %c0_34 = arith.constant 0 : index
    %c0_35 = arith.constant 0 : index
    %93 = vector.load %arg17[%c1, %c0_34, %c0_35] : memref<2x24x32xf32, #tpu.memory_space<vmem>>, vector<1x24x32xf32>
    %94 = vector.shape_cast %93 : vector<1x24x32xf32> to vector<24x32xf32>
    %95 = vector.shape_cast %92 : vector<24x32xf32> to vector<1x24x32xf32>
    tpu.vector_store %arg17[%c1, %c0_34, %c0_35], %95 {strides = array<i32>} : memref<2x24x32xf32, #tpu.memory_space<vmem>>, vector<1x24x32xf32>,
    %96 = arith.truncf %92 : vector<24x32xf32> to vector<24x32xbf16>
    %97 = arith.truncf %56 : vector<32x16xf32> to vector<32x16xbf16>
    %cst_36 = arith.constant dense<0.000000e+00> : vector<24x16xf32>
    %98 = tpu.matmul %96, %97, %cst_36 {dimension_numbers = #tpu.dot_dimension_numbers<[1], [0], [0], [1], [0, 0, 1, 1], [], []>} : vector<24x32xbf16>, vector<32x16xbf16>, vector<24x16xf32> -> vector<24x16xf32>
    %99 = tpu.concatenate %55, %98 in 1 : vector<24x16xf32>, vector<24x16xf32> -> vector<24x32xf32>
    %cst_37 = arith.constant 0.000000e+00 : f32
    %100 = vector.broadcast %cst_37 : f32 to vector<24x32xf32>
    %101 = arith.cmpf ogt, %99, %100 : vector<24x32xf32>
    %102 = math.exp %99 : vector<24x32xf32>
    %cst_38 = arith.constant 1.000000e+00 : f32
    %103 = vector.broadcast %cst_38 : f32 to vector<24x32xf32>
    %104 = arith.subf %102, %103 : vector<24x32xf32>
    %105 = arith.select %101, %99, %104 : vector<24x32xi1>, vector<24x32xf32>
    %106 = vector.extract_strided_slice %105 {offsets = [0, 0], sizes = [16, 32], strides = [1, 1]} : vector<24x32xf32> to vector<16x32xf32>
    %107 = arith.truncf %105 : vector<24x32xf32> to vector<24x32xbf16>
    %c0_39 = arith.constant 0 : index
    %c0_40 = arith.constant 0 : index
    %108 = vector.load %arg7[%c0_39, %c0_40] : memref<32x32xbf16, #tpu.memory_space<vmem>>, vector<32x32xbf16>
    %cst_41 = arith.constant dense<0.000000e+00> : vector<24x32xf32>
    %109 = tpu.matmul %107, %108, %cst_41 {dimension_numbers = #tpu.dot_dimension_numbers<[1], [0], [0], [1], [0, 0, 1, 1], [], []>} : vector<24x32xbf16>, vector<32x32xbf16>, vector<24x32xf32> -> vector<24x32xf32>
    %110 = vector.extract_strided_slice %109 {offsets = [0, 0], sizes = [16, 32], strides = [1, 1]} : vector<24x32xf32> to vector<16x32xf32>
    %c0_42 = arith.constant 0 : index
    %c0_43 = arith.constant 0 : index
    %111 = vector.load %arg8[%c0_42, %c0_43] : memref<1x32xf32, #tpu.memory_space<vmem>>, vector<1x32xf32>
    %c0_44 = arith.constant 0 : index
    %c0_45 = arith.constant 0 : index
    %112 = vector.load %arg9[%c0_44, %c0_45] : memref<1x32xf32, #tpu.memory_space<vmem>>, vector<1x32xf32>
    %c0_46 = arith.constant 0 : index
    %c0_47 = arith.constant 0 : index
    %113 = vector.load %arg6[%c0_46, %c0_47] : memref<16x24xi8, #tpu.memory_space<vmem>>, vector<16x24xi8>
    %c0_i8_48 = arith.constant 0 : i8
    %114 = vector.broadcast %c0_i8_48 : i8 to vector<16x24xi8>
    %115 = arith.cmpi ne, %113, %114 : vector<16x24xi8>
    %116 = vector.extract_strided_slice %109 {offsets = [0, 0], sizes = [24, 16], strides = [1, 1]} : vector<24x32xf32> to vector<24x16xf32>
    %117 = vector.extract_strided_slice %110 {offsets = [0, 0], sizes = [16, 16], strides = [1, 1]} : vector<16x32xf32> to vector<16x16xf32>
    %118 = vector.extract_strided_slice %111 {offsets = [0, 0], sizes = [1, 16], strides = [1, 1]} : vector<1x32xf32> to vector<1x16xf32>
    %119 = vector.broadcast %118 : vector<1x16xf32> to vector<24x16xf32>
    %120 = arith.mulf %116, %119 : vector<24x16xf32>
    %cst_49 = arith.constant dense<0.000000e+00> : vector<24xf32>
    %121 = vector.multi_reduction <add>, %120, %cst_49 [1] : vector<24x16xf32> to vector<24xf32>
    %122 = vector.shape_cast %121 : vector<24xf32> to vector<24x1xf32>
    %123 = vector.extract_strided_slice %112 {offsets = [0, 0], sizes = [1, 16], strides = [1, 1]} : vector<1x32xf32> to vector<1x16xf32>
    %124 = vector.broadcast %123 : vector<1x16xf32> to vector<16x16xf32>
    %125 = arith.mulf %117, %124 : vector<16x16xf32>
    %cst_50 = arith.constant dense<0.000000e+00> : vector<16xf32>
    %126 = vector.multi_reduction <add>, %125, %cst_50 [1] : vector<16x16xf32> to vector<16xf32>
    %127 = vector.shape_cast %126 : vector<16xf32> to vector<16x1xf32>
    %128 = tpu.transpose %122, [1, 0] : vector<24x1xf32> -> vector<1x24xf32>
    %129 = vector.broadcast %127 : vector<16x1xf32> to vector<16x24xf32>
    %130 = vector.broadcast %128 : vector<1x24xf32> to vector<16x24xf32>
    %131 = arith.addf %129, %130 : vector<16x24xf32>
    %cst_51 = arith.constant 0.000000e+00 : f32
    %132 = vector.broadcast %cst_51 : f32 to vector<16x24xf32>
    %133 = arith.cmpf ogt, %131, %132 : vector<16x24xf32>
    %cst_52 = arith.constant 2.000000e-01 : f32
    %134 = vector.broadcast %cst_52 : f32 to vector<16x24xf32>
    %135 = arith.mulf %134, %131 : vector<16x24xf32>
    %136 = arith.select %133, %131, %135 : vector<16x24xi1>, vector<16x24xf32>
    %cst_53 = arith.constant -1.000000e+30 : f32
    %137 = vector.broadcast %cst_53 : f32 to vector<16x24xf32>
    %138 = arith.select %115, %136, %137 : vector<16x24xi1>, vector<16x24xf32>
    %cst_54 = arith.constant dense<0xFF800000> : vector<16xf32>
    %139 = vector.multi_reduction <maximumf>, %138, %cst_54 [1] : vector<16x24xf32> to vector<16xf32>
    %140 = vector.shape_cast %139 : vector<16xf32> to vector<16x1xf32>
    %141 = vector.broadcast %140 : vector<16x1xf32> to vector<16x24xf32>
    %142 = arith.subf %138, %141 : vector<16x24xf32>
    %143 = math.exp %142 : vector<16x24xf32>
    %cst_55 = arith.constant 0.000000e+00 : f32
    %144 = vector.broadcast %cst_55 : f32 to vector<16x24xf32>
    %145 = arith.select %115, %143, %144 : vector<16x24xi1>, vector<16x24xf32>
    %cst_56 = arith.constant dense<0.000000e+00> : vector<16xf32>
    %146 = vector.multi_reduction <add>, %145, %cst_56 [1] : vector<16x24xf32> to vector<16xf32>
    %147 = vector.shape_cast %146 : vector<16xf32> to vector<16x1xf32>
    %cst_57 = arith.constant 9.99999968E-21 : f32
    %148 = vector.broadcast %cst_57 : f32 to vector<16x1xf32>
    %149 = arith.maximumf %147, %148 : vector<16x1xf32>
    %150 = tpu.reciprocal %149 {approx = true} : vector<16x1xf32> -> vector<16x1xf32>
    %151 = vector.broadcast %150 : vector<16x1xf32> to vector<16x24xf32>
    %152 = arith.mulf %145, %151 : vector<16x24xf32>
    %c0_58 = arith.constant 0 : index
    %c0_59 = arith.constant 0 : index
    %c0_60 = arith.constant 0 : index
    %153 = vector.load %arg18[%c0_58, %c0_59, %c0_60] : memref<2x16x24xf32, #tpu.memory_space<vmem>>, vector<1x16x24xf32>
    %154 = vector.shape_cast %153 : vector<1x16x24xf32> to vector<16x24xf32>
    %155 = vector.shape_cast %152 : vector<16x24xf32> to vector<1x16x24xf32>
    tpu.vector_store %arg18[%c0_58, %c0_59, %c0_60], %155 {strides = array<i32>} : memref<2x16x24xf32, #tpu.memory_space<vmem>>, vector<1x16x24xf32>,
    %156 = arith.truncf %152 : vector<16x24xf32> to vector<16x24xbf16>
    %157 = arith.truncf %116 : vector<24x16xf32> to vector<24x16xbf16>
    %cst_61 = arith.constant dense<0.000000e+00> : vector<16x16xf32>
    %158 = tpu.matmul %156, %157, %cst_61 {dimension_numbers = #tpu.dot_dimension_numbers<[1], [0], [0], [1], [0, 0, 1, 1], [], []>} : vector<16x24xbf16>, vector<24x16xbf16>, vector<16x16xf32> -> vector<16x16xf32>
    %159 = vector.extract_strided_slice %109 {offsets = [0, 16], sizes = [24, 16], strides = [1, 1]} : vector<24x32xf32> to vector<24x16xf32>
    %160 = vector.extract_strided_slice %110 {offsets = [0, 16], sizes = [16, 16], strides = [1, 1]} : vector<16x32xf32> to vector<16x16xf32>
    %161 = vector.extract_strided_slice %111 {offsets = [0, 16], sizes = [1, 16], strides = [1, 1]} : vector<1x32xf32> to vector<1x16xf32>
    %162 = vector.broadcast %161 : vector<1x16xf32> to vector<24x16xf32>
    %163 = arith.mulf %159, %162 : vector<24x16xf32>
    %cst_62 = arith.constant dense<0.000000e+00> : vector<24xf32>
    %164 = vector.multi_reduction <add>, %163, %cst_62 [1] : vector<24x16xf32> to vector<24xf32>
    %165 = vector.shape_cast %164 : vector<24xf32> to vector<24x1xf32>
    %166 = vector.extract_strided_slice %112 {offsets = [0, 16], sizes = [1, 16], strides = [1, 1]} : vector<1x32xf32> to vector<1x16xf32>
    %167 = vector.broadcast %166 : vector<1x16xf32> to vector<16x16xf32>
    %168 = arith.mulf %160, %167 : vector<16x16xf32>
    %cst_63 = arith.constant dense<0.000000e+00> : vector<16xf32>
    %169 = vector.multi_reduction <add>, %168, %cst_63 [1] : vector<16x16xf32> to vector<16xf32>
    %170 = vector.shape_cast %169 : vector<16xf32> to vector<16x1xf32>
    %171 = tpu.transpose %165, [1, 0] : vector<24x1xf32> -> vector<1x24xf32>
    %172 = vector.broadcast %170 : vector<16x1xf32> to vector<16x24xf32>
    %173 = vector.broadcast %171 : vector<1x24xf32> to vector<16x24xf32>
    %174 = arith.addf %172, %173 : vector<16x24xf32>
    %cst_64 = arith.constant 0.000000e+00 : f32
    %175 = vector.broadcast %cst_64 : f32 to vector<16x24xf32>
    %176 = arith.cmpf ogt, %174, %175 : vector<16x24xf32>
    %cst_65 = arith.constant 2.000000e-01 : f32
    %177 = vector.broadcast %cst_65 : f32 to vector<16x24xf32>
    %178 = arith.mulf %177, %174 : vector<16x24xf32>
    %179 = arith.select %176, %174, %178 : vector<16x24xi1>, vector<16x24xf32>
    %cst_66 = arith.constant -1.000000e+30 : f32
    %180 = vector.broadcast %cst_66 : f32 to vector<16x24xf32>
    %181 = arith.select %115, %179, %180 : vector<16x24xi1>, vector<16x24xf32>
    %cst_67 = arith.constant dense<0xFF800000> : vector<16xf32>
    %182 = vector.multi_reduction <maximumf>, %181, %cst_67 [1] : vector<16x24xf32> to vector<16xf32>
    %183 = vector.shape_cast %182 : vector<16xf32> to vector<16x1xf32>
    %184 = vector.broadcast %183 : vector<16x1xf32> to vector<16x24xf32>
    %185 = arith.subf %181, %184 : vector<16x24xf32>
    %186 = math.exp %185 : vector<16x24xf32>
    %cst_68 = arith.constant 0.000000e+00 : f32
    %187 = vector.broadcast %cst_68 : f32 to vector<16x24xf32>
    %188 = arith.select %115, %186, %187 : vector<16x24xi1>, vector<16x24xf32>
    %cst_69 = arith.constant dense<0.000000e+00> : vector<16xf32>
    %189 = vector.multi_reduction <add>, %188, %cst_69 [1] : vector<16x24xf32> to vector<16xf32>
    %190 = vector.shape_cast %189 : vector<16xf32> to vector<16x1xf32>
    %cst_70 = arith.constant 9.99999968E-21 : f32
    %191 = vector.broadcast %cst_70 : f32 to vector<16x1xf32>
    %192 = arith.maximumf %190, %191 : vector<16x1xf32>
    %193 = tpu.reciprocal %192 {approx = true} : vector<16x1xf32> -> vector<16x1xf32>
    %194 = vector.broadcast %193 : vector<16x1xf32> to vector<16x24xf32>
    %195 = arith.mulf %188, %194 : vector<16x24xf32>
    %c1_71 = arith.constant 1 : index
    %c0_72 = arith.constant 0 : index
    %c0_73 = arith.constant 0 : index
    %196 = vector.load %arg18[%c1_71, %c0_72, %c0_73] : memref<2x16x24xf32, #tpu.memory_space<vmem>>, vector<1x16x24xf32>
    %197 = vector.shape_cast %196 : vector<1x16x24xf32> to vector<16x24xf32>
    %198 = vector.shape_cast %195 : vector<16x24xf32> to vector<1x16x24xf32>
    tpu.vector_store %arg18[%c1_71, %c0_72, %c0_73], %198 {strides = array<i32>} : memref<2x16x24xf32, #tpu.memory_space<vmem>>, vector<1x16x24xf32>,
    %199 = arith.truncf %195 : vector<16x24xf32> to vector<16x24xbf16>
    %200 = arith.truncf %159 : vector<24x16xf32> to vector<24x16xbf16>
    %cst_74 = arith.constant dense<0.000000e+00> : vector<16x16xf32>
    %201 = tpu.matmul %199, %200, %cst_74 {dimension_numbers = #tpu.dot_dimension_numbers<[1], [0], [0], [1], [0, 0, 1, 1], [], []>} : vector<16x24xbf16>, vector<24x16xbf16>, vector<16x16xf32> -> vector<16x16xf32>
    %202 = tpu.concatenate %158, %201 in 1 : vector<16x16xf32>, vector<16x16xf32> -> vector<16x32xf32>
    %203 = arith.addf %202, %106 : vector<16x32xf32>
    %cst_75 = arith.constant 0.000000e+00 : f32
    %204 = vector.broadcast %cst_75 : f32 to vector<16x32xf32>
    %205 = arith.cmpf ogt, %203, %204 : vector<16x32xf32>
    %206 = math.exp %203 : vector<16x32xf32>
    %cst_76 = arith.constant 1.000000e+00 : f32
    %207 = vector.broadcast %cst_76 : f32 to vector<16x32xf32>
    %208 = arith.subf %206, %207 : vector<16x32xf32>
    %209 = arith.select %205, %203, %208 : vector<16x32xi1>, vector<16x32xf32>
    %cst_77 = arith.constant 0.000000e+00 : f32
    %210 = vector.broadcast %cst_77 : f32 to vector<16x32xf32>
    %211 = arith.cmpf ogt, %209, %210 : vector<16x32xf32>
    %212 = math.exp %209 : vector<16x32xf32>
    %cst_78 = arith.constant 1.000000e+00 : f32
    %213 = vector.broadcast %cst_78 : f32 to vector<16x32xf32>
    %214 = arith.subf %212, %213 : vector<16x32xf32>
    %215 = arith.select %211, %209, %214 : vector<16x32xi1>, vector<16x32xf32>
    %216 = vector.extract_strided_slice %215 {offsets = [0, 0], sizes = [8, 32], strides = [1, 1]} : vector<16x32xf32> to vector<8x32xf32>
    %217 = arith.truncf %215 : vector<16x32xf32> to vector<16x32xbf16>
    %c0_79 = arith.constant 0 : index
    %c0_80 = arith.constant 0 : index
    %218 = vector.load %arg11[%c0_79, %c0_80] : memref<32x4xbf16, #tpu.memory_space<vmem>>, vector<32x4xbf16>
    %cst_81 = arith.constant dense<0.000000e+00> : vector<16x4xf32>
    %219 = tpu.matmul %217, %218, %cst_81 {dimension_numbers = #tpu.dot_dimension_numbers<[1], [0], [0], [1], [0, 0, 1, 1], [], []>} : vector<16x32xbf16>, vector<32x4xbf16>, vector<16x4xf32> -> vector<16x4xf32>
    %220 = arith.truncf %216 : vector<8x32xf32> to vector<8x32xbf16>
    %c0_82 = arith.constant 0 : index
    %c0_83 = arith.constant 0 : index
    %221 = vector.load %arg12[%c0_82, %c0_83] : memref<32x4xbf16, #tpu.memory_space<vmem>>, vector<32x4xbf16>
    %cst_84 = arith.constant dense<0.000000e+00> : vector<8x4xf32>
    %222 = tpu.matmul %220, %221, %cst_84 {dimension_numbers = #tpu.dot_dimension_numbers<[1], [0], [0], [1], [0, 0, 1, 1], [], []>} : vector<8x32xbf16>, vector<32x4xbf16>, vector<8x4xf32> -> vector<8x4xf32>
    %c0_85 = arith.constant 0 : index
    %c0_86 = arith.constant 0 : index
    %223 = vector.load %arg13[%c0_85, %c0_86] : memref<1x4xf32, #tpu.memory_space<vmem>>, vector<1x4xf32>
    %c0_87 = arith.constant 0 : index
    %c0_88 = arith.constant 0 : index
    %224 = vector.load %arg14[%c0_87, %c0_88] : memref<1x4xf32, #tpu.memory_space<vmem>>, vector<1x4xf32>
    %c0_89 = arith.constant 0 : index
    %c0_90 = arith.constant 0 : index
    %225 = vector.load %arg10[%c0_89, %c0_90] : memref<8x16xi8, #tpu.memory_space<vmem>>, vector<8x16xi8>
    %c0_i8_91 = arith.constant 0 : i8
    %226 = vector.broadcast %c0_i8_91 : i8 to vector<8x16xi8>
    %227 = arith.cmpi ne, %225, %226 : vector<8x16xi8>
    %228 = arith.truncf %216 : vector<8x32xf32> to vector<8x32xbf16>
    %c0_92 = arith.constant 0 : index
    %c0_93 = arith.constant 0 : index
    %229 = vector.load %arg15[%c0_92, %c0_93] : memref<32x4xbf16, #tpu.memory_space<vmem>>, vector<32x4xbf16>
    %cst_94 = arith.constant dense<0.000000e+00> : vector<8x4xf32>
    %230 = tpu.matmul %228, %229, %cst_94 {dimension_numbers = #tpu.dot_dimension_numbers<[1], [0], [0], [1], [0, 0, 1, 1], [], []>} : vector<8x32xbf16>, vector<32x4xbf16>, vector<8x4xf32> -> vector<8x4xf32>
    %231 = vector.broadcast %223 : vector<1x4xf32> to vector<16x4xf32>
    %232 = arith.mulf %219, %231 : vector<16x4xf32>
    %cst_95 = arith.constant dense<0.000000e+00> : vector<16xf32>
    %233 = vector.multi_reduction <add>, %232, %cst_95 [1] : vector<16x4xf32> to vector<16xf32>
    %234 = vector.shape_cast %233 : vector<16xf32> to vector<16x1xf32>
    %235 = vector.broadcast %224 : vector<1x4xf32> to vector<8x4xf32>
    %236 = arith.mulf %222, %235 : vector<8x4xf32>
    %cst_96 = arith.constant dense<0.000000e+00> : vector<8xf32>
    %237 = vector.multi_reduction <add>, %236, %cst_96 [1] : vector<8x4xf32> to vector<8xf32>
    %238 = vector.shape_cast %237 : vector<8xf32> to vector<8x1xf32>
    %239 = tpu.transpose %234, [1, 0] : vector<16x1xf32> -> vector<1x16xf32>
    %240 = vector.broadcast %238 : vector<8x1xf32> to vector<8x16xf32>
    %241 = vector.broadcast %239 : vector<1x16xf32> to vector<8x16xf32>
    %242 = arith.addf %240, %241 : vector<8x16xf32>
    %cst_97 = arith.constant 0.000000e+00 : f32
    %243 = vector.broadcast %cst_97 : f32 to vector<8x16xf32>
    %244 = arith.cmpf ogt, %242, %243 : vector<8x16xf32>
    %cst_98 = arith.constant 2.000000e-01 : f32
    %245 = vector.broadcast %cst_98 : f32 to vector<8x16xf32>
    %246 = arith.mulf %245, %242 : vector<8x16xf32>
    %247 = arith.select %244, %242, %246 : vector<8x16xi1>, vector<8x16xf32>
    %cst_99 = arith.constant -1.000000e+30 : f32
    %248 = vector.broadcast %cst_99 : f32 to vector<8x16xf32>
    %249 = arith.select %227, %247, %248 : vector<8x16xi1>, vector<8x16xf32>
    %cst_100 = arith.constant dense<0xFF800000> : vector<8xf32>
    %250 = vector.multi_reduction <maximumf>, %249, %cst_100 [1] : vector<8x16xf32> to vector<8xf32>
    %251 = vector.shape_cast %250 : vector<8xf32> to vector<8x1xf32>
    %252 = vector.broadcast %251 : vector<8x1xf32> to vector<8x16xf32>
    %253 = arith.subf %249, %252 : vector<8x16xf32>
    %254 = math.exp %253 : vector<8x16xf32>
    %cst_101 = arith.constant 0.000000e+00 : f32
    %255 = vector.broadcast %cst_101 : f32 to vector<8x16xf32>
    %256 = arith.select %227, %254, %255 : vector<8x16xi1>, vector<8x16xf32>
    %cst_102 = arith.constant dense<0.000000e+00> : vector<8xf32>
    %257 = vector.multi_reduction <add>, %256, %cst_102 [1] : vector<8x16xf32> to vector<8xf32>
    %258 = vector.shape_cast %257 : vector<8xf32> to vector<8x1xf32>
    %cst_103 = arith.constant 9.99999968E-21 : f32
    %259 = vector.broadcast %cst_103 : f32 to vector<8x1xf32>
    %260 = arith.maximumf %258, %259 : vector<8x1xf32>
    %261 = tpu.reciprocal %260 {approx = true} : vector<8x1xf32> -> vector<8x1xf32>
    %262 = vector.broadcast %261 : vector<8x1xf32> to vector<8x16xf32>
    %263 = arith.mulf %256, %262 : vector<8x16xf32>
    %c0_104 = arith.constant 0 : index
    %c0_105 = arith.constant 0 : index
    %c0_106 = arith.constant 0 : index
    %264 = vector.load %arg19[%c0_104, %c0_105, %c0_106] : memref<1x8x16xf32, #tpu.memory_space<vmem>>, vector<1x8x16xf32>
    %265 = vector.shape_cast %264 : vector<1x8x16xf32> to vector<8x16xf32>
    %266 = vector.shape_cast %263 : vector<8x16xf32> to vector<1x8x16xf32>
    tpu.vector_store %arg19[%c0_104, %c0_105, %c0_106], %266 {strides = array<i32>} : memref<1x8x16xf32, #tpu.memory_space<vmem>>, vector<1x8x16xf32>,
    %267 = arith.truncf %263 : vector<8x16xf32> to vector<8x16xbf16>
    %268 = arith.truncf %219 : vector<16x4xf32> to vector<16x4xbf16>
    %cst_107 = arith.constant dense<0.000000e+00> : vector<8x4xf32>
    %269 = tpu.matmul %267, %268, %cst_107 {dimension_numbers = #tpu.dot_dimension_numbers<[1], [0], [0], [1], [0, 0, 1, 1], [], []>} : vector<8x16xbf16>, vector<16x4xbf16>, vector<8x4xf32> -> vector<8x4xf32>
    %270 = arith.addf %269, %230 : vector<8x4xf32>
    %c0_108 = arith.constant 0 : index
    %c0_109 = arith.constant 0 : index
    %271 = vector.load %arg16[%c0_108, %c0_109] : memref<8x4xf32, #tpu.memory_space<vmem>>, vector<8x4xf32>
    tpu.vector_store %arg16[%c0_108, %c0_109], %270 {strides = array<i32>} : memref<8x4xf32, #tpu.memory_space<vmem>>, vector<8x4xf32>,
    return
  }
}

</mosaic_0001>

<bundles_post_ra>
// kernel: tpu_custom_call.1
= control target key start
LH: loop header
LB: loop body
LE: loop exit
PB: predicated region body
PF: predicated region fallthrough
CT: control target
= control target key end

     0   :  { %s1696_s0 = inlined_call_operand.vmem [shape: f32[32,8], index: 0, kind: input, shape index: {}]   ;;  %s1697_s1 = inlined_call_operand.vmem [shape: s8[24,32], index: 1, kind: input, shape index: {}]   ;;  %s1698_s2 = inlined_call_operand.vmem [shape: bf16[8,32], index: 2, kind: input, shape index: {}]   ;;  %s1699_s3 = inlined_call_operand.vmem [shape: bf16[8,32], index: 3, kind: input, shape index: {}]   ;;  %s1700_s4 = inlined_call_operand.vmem [shape: f32[1,32], index: 4, kind: input, shape index: {}]   ;;  %s1701_s5 = inlined_call_operand.vmem [shape: f32[1,32], index: 5, kind: input, shape index: {}]   ;;  %s1702_s6 = inlined_call_operand.vmem [shape: s8[16,24], index: 6, kind: input, shape index: {}]   ;;  %s1703_s7 = inlined_call_operand.vmem [shape: bf16[32,32], index: 7, kind: input, shape index: {}]   ;;  %s1704_s8 = inlined_call_operand.vmem [shape: f32[1,32], index: 8, kind: input, shape index: {}]   ;;  %s1705_s9 = inlined_call_operand.vmem [shape: f32[1,32], index: 9, kind: input, shape index: {}]   ;;  %s1706_s10 = inlined_call_operand.vmem [shape: s8[8,16], index: 10, kind: input, shape index: {}]   ;;  %s1707_s11 = inlined_call_operand.vmem [shape: bf16[32,4], index: 11, kind: input, shape index: {}]   ;;  %s1708_s12 = inlined_call_operand.vmem [shape: bf16[32,4], index: 12, kind: input, shape index: {}]   ;;  %s1709_s13 = inlined_call_operand.vmem [shape: f32[1,4], index: 13, kind: input, shape index: {}]   ;;  %s1710_s14 = inlined_call_operand.vmem [shape: f32[1,4], index: 14, kind: input, shape index: {}]   ;;  %s1711_s15 = inlined_call_operand.vmem [shape: bf16[32,4], index: 15, kind: input, shape index: {}]   ;;  %s1712_s16 = inlined_call_operand.vmem [shape: f32[8,4], index: 16, kind: output, shape index: {0}]   ;;  %s1713_s17 = inlined_call_operand.hbm [shape: f32[2,24,32], index: 17, kind: output, shape index: {1}]   ;;  %s1714_s18 = inlined_call_operand.hbm [shape: f32[2,16,24], index: 18, kind: output, shape index: {2}]   ;;  %s1715_s19 = inlined_call_operand.hbm [shape: f32[1,8,16], index: 19, kind: output, shape index: {3}]  }
   0x1   :  { %1718 = sst [smem:[#allocation9_spill]] %s1696_s0 }
   0x2   :  { %1719 = sst [smem:[#allocation10_spill]] %s1697_s1 }
   0x3   :  { %1720 = sst [smem:[#allocation11_spill]] %s1698_s2 }
   0x4   :  { %1721 = sst [smem:[#allocation12_spill]] %s1699_s3 }
   0x5   :  { %25 = vsyncpa [#allocation3], 0  ;;  %s1722_s20 = sld [smem:[#allocation11_spill]]  ;;  %vm76_vm0 = vcmask 1043456   ;;  %vm69_vm1 = vcmask 64512  }
   0x6   :  { %s1723_s22 = sld [smem:[#allocation12_spill]] }
   0x7   :  { %s1724_s24 = sld [smem:[#allocation9_spill]] }
   0xb   :  { %v68_v0 = vld [vmem:[%s1722_s20] sm:$0xf] }
   0xc   :  { %v100_v1 = vld [vmem:[%s1723_s22] sm:$0xf]  ;;  %v78_v3 = vsel %vm76_vm0, %v68_v0, 0 }
   0xd   :  { %v62_v2 = vld [vmem:[%s1724_s24] sm:$0xff]  ;;  %v105_v4 = vsel %vm76_vm0, %v100_v1, 0  ;;  %v63_v5 = vld [vmem:[%s1724_s24 + $0x8] sm:$0xff]  ;;  %87 = vmatpush.bf16.msra.mxu0 %v78_v3 }
   0xe   :  { %114 = vmatpush.bf16.msra.mxu1 %v105_v4  ;;  %v66_v6 = vpack.c.bf16 %v63_v5, %v62_v2 }
   0xf   :  { %26 = vsyncpa [#allocation5], 0  ;;  %v64_v7 = vld [vmem:[%s1724_s24 + $0x10] sm:$0xff]  ;;  %v65_v8 = vld [vmem:[%s1724_s24 + $0x18] sm:$0xff]  ;;  %vm140_vm2 = vcmask 130048   ;;  %s1302_s1 = smov 112  }
  0x10   :  { %1090 = vmatmul.msk.bf16.vlgmr.msra.gmra.mxu0 %vm69_vm1, %v66_v6  ;;  %v67_v9 = vpack.c.bf16 %v65_v8, %v64_v7  ;;  %v99_v10 = vpack.c.bf16 %v64_v7, %v64_v7  ;;  %v1162_v11 = vld [vmem:[%s1701_s5] ss:$0 sm:$0xff]  ;;  %s1725_s22 = sld [smem:[#allocation10_spill]]  ;;  %v1303_v1 = vmov 0   ;;  %vm225_vm10 = vcmask 261120   ;;  %s1304_s3 = smov 16  }
  0x11   :  { %1092 = vmatmul.msk.bf16.vlgmr.msra.gmra.mxu1 %vm69_vm1, %v66_v6  ;;  %v1163_v12 = vld [vmem:[%s1700_s4] ss:$0 sm:$0xff]  ;;  %s1056_s20 = sshll.u32 %s1714_s18, 4  ;;  %s1070_s18 = sshll.u32 %s1715_s19, 4  ;;  %s1057_s20 = int_to_ptr.hbm [resolvable:$true] %s1056_s20  ;;  %s1071_s18 = int_to_ptr.hbm [resolvable:$true] %s1070_s18 }
  0x16   :  { %v129_v63 = vld [vmem:[%s1725_s22 + $0x4] sm:$0x3]  ;;  %v127_v0 = vld [vmem:[%s1725_s22] sm:$0x3]  ;;  %v128_v4 = vld [vmem:[%s1725_s22 + $0x2] sm:$0x3] }
  0x17   :  { %vm132_vm3 = vnez %v129_v63  ;;  %vm130_vm4 = vnez %v127_v0  ;;  %vm131_vm5 = vnez %v128_v4  ;;  %s1309_s22 = smov [#allocation6]  }
  0x18   :  { %v215_v2 = vsel %vm132_vm3, 16843009, %v1303_v1  ;;  %v213_v3 = vsel %vm130_vm4, 16843009, %v1303_v1  ;;  %s1068_s2 = sshll.u32 %s1309_s22, 4  ;;  %s1069_s2 = int_to_ptr.vmem [resolvable:$true] %s1068_s2 }
  0x19   :  { %v218_v7 = vunpack.c.0.s8 %v215_v2  ;;  %v216_v8 = vunpack.c.0.s8 %v213_v3 }
  0x1b   :  { %vm1474_vm6 = vcmp.ne.s32.totalorder %v218_v7, 0  ;;  %vm1478_vm7 = vcmp.ne.s32.totalorder %v216_v8, 0 }
  0x20   :  { %1091 = vmatmul.msk.bf16.gmra.mxu0 %vm69_vm1, %v67_v9 }
  0x21   :  { %1093 = vmatmul.msk.bf16.gmra.mxu1 %vm69_vm1, %v99_v10 }
  0x8d   :  { %v89_v13 = vpop.f32.mrf.mxu0 }
  0x8e   :  { %v116_v14 = vpop.f32.mrf.mxu1  ;;  %v136_v16 = vmul.f32 %v1163_v12, %v89_v13 }
  0x8f   :  { %v156_v15 = vmul.f32 %v1162_v11, %v116_v14 }
  0x90   :  { %300 = vrot.lane.b32.xlu0 %v136_v16, %s1302_s1  ;;  %v141_v17 = vsel %vm140_vm2, %v136_v16, 0.0 }
  0x91   :  { %327 = vrot.lane.b32.xlu2 %v156_v15, %s1302_s1  ;;  %142 = vadd.xlane.f32.xlu1 %v141_v17  ;;  %v159_v22 = vsel %vm140_vm2, %v156_v15, 0.0  ;;  %v214_v15 = vsel %vm131_vm5, 16843009, %v1303_v1 }
  0x95   :  { %v91_v18 = vpop.f32.mrf.mxu0 }
  0x96   :  { %v118_v19 = vpop.f32.mrf.mxu1  ;;  %v137_v20 = vmul.f32 %v1163_v12, %v91_v18  ;;  %v1447_v30 = vpack.c.bf16 %v91_v18, %v89_v13 }
  0x97   :  { %v157_v21 = vmul.f32 %v1162_v11, %v118_v19 }
  0x98   :  { %302 = vrot.lane.b32.xlu0 %v137_v20, %s1302_s1  ;;  %v144_v32 = vsel %vm140_vm2, %v137_v20, 0.0 }
  0x99   :  { %329 = vrot.lane.b32.xlu2 %v157_v21, %s1302_s1  ;;  %160 = vadd.xlane.f32.xlu1 %v159_v22  ;;  %v162_v26 = vsel %vm140_vm2, %v157_v21, 0.0  ;;  %v217_v21 = vunpack.c.0.s8 %v214_v15 }
  0x9b   :  { %vm1492_vm12 = vcmp.ne.s32.totalorder %v217_v21, 0 }
  0x9d   :  { %v94_v23 = vpop.f32.mrf.mxu0 }
  0x9e   :  { %v121_v24 = vpop.f32.mrf.mxu1  ;;  %v138_v31 = vmul.f32 %v1163_v12, %v94_v23 }
  0x9f   :  { %v158_v25 = vmul.f32 %v1162_v11, %v121_v24 }
  0xa0   :  { %v147_v35 = vsel %vm140_vm2, %v138_v31, 0.0 }
  0xa1   :  { %331 = vrot.lane.b32.xlu0 %v158_v25, %s1302_s1  ;;  %163 = vadd.xlane.f32.xlu1 %v162_v26  ;;  %v165_v36 = vsel %vm140_vm2, %v158_v25, 0.0 }
  0xa5   :  { %v96_v27 = vpop.f32.mrf.mxu0 }
  0xa6   :  { %v123_v28 = vpop.f32.mrf.mxu1  ;;  %v1444_v29 = vpack.c.bf16 %v96_v27, %v94_v23  ;;  %v139_v33 = vmul.f32 %v1163_v12, %v96_v27 }
  0xa8   :  { %284 = vmatpush.bf16.msra.mxu2 %v1444_v29  ;;  %v150_v34 = vsel %vm140_vm2, %v139_v33, 0.0 }
  0xac   :  { %285 = vmatpush.bf16.msra.mxu2 %v1447_v30 }
  0xba   :  { %304 = vrot.lane.b32.xlu1 %v138_v31, %s1302_s1 }
  0xc2   :  { %145 = vadd.xlane.f32.xlu2 %v144_v32 }
  0xcb   :  { %151 = vadd.xlane.f32.xlu0 %v150_v34 }
  0xe4   :  { %148 = vadd.xlane.f32.xlu1 %v147_v35 }
  0xeb   :  { %v328_v37 = vpop.permute.xlu2 %327 }
  0xec   :  { %166 = vadd.xlane.f32.xlu1 %v165_v36  ;;  %v336_v47 = vsel %vm140_vm2, %v328_v37, 0.0 }
  0xf3   :  { %v330_v38 = vpop.permute.xlu2 %329 }
  0xf4   :  { %v339_v39 = vsel %vm140_vm2, %v330_v38, 0.0 }
  0xf5   :  { %340 = vadd.xlane.f32.xlu2 %v339_v39 }
 0x102   :  { %v301_v40 = vpop.permute.xlu0 %300 }
 0x103   :  { %v312_v41 = vsel %vm140_vm2, %v301_v40, 0.0 }
 0x104   :  { %313 = vadd.xlane.f32.xlu0 %v312_v41  ;;  %v143_v42 = vpop.xlane.xlu1 %142 }
 0x105   :  { %306 = vrot.lane.b32.xlu1 %v139_v33, %s1302_s1 }
 0x10a   :  { %v303_v48 = vpop.permute.xlu0 %302 }
 0x10b   :  { %v315_v50 = vsel %vm140_vm2, %v303_v48, 0.0 }
 0x10c   :  { %v161_v43 = vpop.xlane.xlu1 %160 }
 0x113   :  { %v332_v51 = vpop.permute.xlu0 %331 }
 0x114   :  { %v164_v44 = vpop.xlane.xlu1 %163  ;;  %v342_v52 = vsel %vm140_vm2, %v332_v51, 0.0 }
 0x12c   :  { %v305_v45 = vpop.permute.xlu1 %304 }
 0x12d   :  { %168 = vxpose.xlu0.b32.start [1/4] (short) (narrow) %v143_v42, 8  ;;  %v318_v46 = vsel %vm140_vm2, %v305_v45, 0.0 }
 0x12e   :  { %319 = vadd.xlane.f32.xlu2 %v318_v46 }
 0x12f   :  { %337 = vadd.xlane.f32.xlu1 %v336_v47 }
 0x135   :  { %v146_v49 = vpop.xlane.xlu2 %145 }
 0x136   :  { %169 = vxpose.xlu0.b32.cont [2/4] (short) (narrow) %v146_v49, 8 }
 0x137   :  { %316 = vadd.xlane.f32.xlu1 %v315_v50 }
 0x13e   :  { %v152_v54 = vpop.xlane.xlu0 %151 }
 0x13f   :  { %343 = vadd.xlane.f32.xlu1 %v342_v52 }
 0x157   :  { %v149_v53 = vpop.xlane.xlu1 %148 }
 0x158   :  { %170 = vxpose.xlu0.b32.cont [3/4] (short) (narrow) %v149_v53, 8 }
 0x15f   :  { %v167_v55 = vpop.xlane.xlu1 %166 }
 0x160   :  { %171 = vxpose.xlu0.b32.end [4/4] (short) (narrow) %v152_v54, 8 }
 0x168   :  { %v341_v60 = vpop.xlane.xlu2 %340 }
 0x177   :  { %v307_v56 = vpop.permute.xlu1 %306  ;;  %v314_v58 = vpop.xlane.xlu0 %313 }
 0x178   :  { %v321_v57 = vsel %vm140_vm2, %v307_v56, 0.0 }
 0x179   :  { %322 = vadd.xlane.f32.xlu2 %v321_v57 }
 0x1a1   :  { %v320_v62 = vpop.xlane.xlu2 %319 }
 0x1a2   :  { %v338_v59 = vpop.xlane.xlu1 %337  ;;  %345 = vxpose.xlu2.b32.start [1/4] (short) (narrow) %v314_v58, 8 }
 0x1aa   :  { %v317_v61 = vpop.xlane.xlu1 %316 }
 0x1ab   :  { %346 = vxpose.xlu2.b32.cont [2/4] (short) (narrow) %v317_v61, 8 }
 0x1b2   :  { %v344_v41 = vpop.xlane.xlu1 %343 }
 0x1b3   :  { %347 = vxpose.xlu2.b32.cont [3/4] (short) (narrow) %v320_v62, 8 }
 0x1ec   :  { %v323_v5 = vpop.xlane.xlu2 %322  ;;  %v184_v6 = vpop.trf.xlu0 }
 0x1ed   :  { %v200_v9 = vperm.slane %v184_v6, 0  ;;  %348 = vxpose.xlu2.b32.end [4/4] (short) (narrow) %v323_v5, 8 }
 0x1ef   :  { %v201_v10 = vadd.f32 %v200_v9, %v161_v43  ;;  %v202_v11 = vadd.f32 %v200_v9, %v164_v44  ;;  %v203_v12 = vadd.f32 %v200_v9, %v167_v55 }
 0x1f1   :  { %vm206_vm8 = vcmp.gt.f32.partialorder %v203_v12, 0.0  ;;  %v209_v16 = vmul.f32 0.2, %v203_v12  ;;  %vm204_vm9 = vcmp.gt.f32.partialorder %v201_v10, 0.0  ;;  %v207_v17 = vmul.f32 0.2, %v201_v10 }
 0x1f2   :  { %v208_v20 = vmul.f32 0.2, %v202_v11  ;;  %vm205_vm11 = vcmp.gt.f32.partialorder %v202_v11, 0.0 }
 0x1f3   :  { %v212_v18 = vsel %vm206_vm8, %v203_v12, %v209_v16  ;;  %v210_v19 = vsel %vm204_vm9, %v201_v10, %v207_v17  ;;  %vm623_vm8 = vcmask 195584  }
 0x1f4   :  { %v1485_v22 = vsel %vm1474_vm6, %v212_v18, -1e+30  ;;  %v222_v23 = vsel %vm1478_vm7, %v210_v19, -1e+30  ;;  %v211_v26 = vsel %vm205_vm11, %v202_v11, %v208_v20 }
 0x1f5   :  { %v232_v24 = vsel %vm225_vm10, %v1485_v22, -inf  ;;  %v226_v25 = vsel %vm225_vm10, %v222_v23, -inf  ;;  %v223_v28 = vsel %vm1492_vm12, %v211_v26, -1e+30 }
 0x1f6   :  { %233 = vmax.xlane.f32.xlu0 %v232_v24  ;;  %227 = vmax.xlane.f32.xlu1 %v226_v25  ;;  %v229_v31 = vsel %vm225_vm10, %v223_v28, -inf }
 0x1fe   :  { %230 = vmax.xlane.f32.xlu1 %v229_v31 }
 0x269   :  { %v228_v50 = vpop.xlane.xlu1 %227  ;;  %v234_v11 = vpop.xlane.xlu0 %233 }
 0x26a   :  { %v235_v4 = vsub.f32 %v222_v23, %v228_v50  ;;  %v237_v15 = vsub.f32 %v1485_v22, %v234_v11 }
 0x26c   :  { %v238_v5 = vmul.f32 1.442695, %v235_v4  ;;  %v242_v16 = vmul.f32 1.442695, %v237_v15 }
 0x26e   :  { %v361_v32 = vpop.trf.xlu2 }
 0x26f   :  { %v377_v33 = vperm.slane %v361_v32, 0 }
 0x271   :  { %v378_v34 = vadd.f32 %v377_v33, %v338_v59  ;;  %v379_v35 = vadd.f32 %v377_v33, %v341_v60  ;;  %v380_v42 = vadd.f32 %v377_v33, %v344_v41  ;;  %v231_v51 = vpop.xlane.xlu1 %230 }
 0x272   :  { %v236_v7 = vsub.f32 %v223_v28, %v231_v51 }
 0x273   :  { %vm381_vm13 = vcmp.gt.f32.partialorder %v378_v34, 0.0  ;;  %v384_v36 = vmul.f32 0.2, %v378_v34  ;;  %v385_v38 = vmul.f32 0.2, %v379_v35  ;;  %vm382_vm14 = vcmp.gt.f32.partialorder %v379_v35, 0.0 }
 0x274   :  { %v386_v45 = vmul.f32 0.2, %v380_v42  ;;  %vm383_vm15 = vcmp.gt.f32.partialorder %v380_v42, 0.0  ;;  %v240_v9 = vmul.f32 1.442695, %v236_v7 }
 0x275   :  { %v387_v37 = vsel %vm381_vm13, %v378_v34, %v384_v36  ;;  %v388_v43 = vsel %vm382_vm14, %v379_v35, %v385_v38 }
 0x276   :  { %v390_v39 = vsel %vm1478_vm7, %v387_v37, -1e+30  ;;  %v391_v44 = vsel %vm1492_vm12, %v388_v43, -1e+30  ;;  %v389_v47 = vsel %vm383_vm15, %v380_v42, %v386_v45 }
 0x277   :  { %v393_v40 = vsel %vm225_vm10, %v390_v39, -inf  ;;  %v396_v46 = vsel %vm225_vm10, %v391_v44, -inf  ;;  %v392_v48 = vsel %vm1474_vm6, %v389_v47, -1e+30 }
 0x278   :  { %394 = vmax.xlane.f32.xlu1 %v393_v40  ;;  %v399_v49 = vsel %vm225_vm10, %v392_v48, -inf }
 0x280   :  { %397 = vmax.xlane.f32.xlu1 %v396_v46 }
 0x288   :  { %400 = vmax.xlane.f32.xlu1 %v399_v49 }
 0x2a1   :  { %442 = vrot.lane.b32.xlu1 %v1444_v29, %s1302_s1 }
 0x2eb   :  { %v395_v52 = vpop.xlane.xlu1 %394 }
 0x2ec   :  { %v402_v53 = vsub.f32 %v390_v39, %v395_v52 }
 0x2ee   :  { %v405_v54 = vmul.f32 1.442695, %v402_v53 }
 0x2f0   :  { %1168 = vpow2.f32 %v405_v54 }
 0x2f3   :  { %v398_v55 = vpop.xlane.xlu1 %397 }
 0x2f4   :  { %v403_v56 = vsub.f32 %v391_v44, %v398_v55 }
 0x2f6   :  { %v1169_v57 = vpop.eup %1168  ;;  %v407_v58 = vmul.f32 1.442695, %v403_v56 }
 0x2f7   :  { %v411_v59 = vsel %vm1478_vm7, %v1169_v57, 0.0 }
 0x2f8   :  { %1170 = vpow2.f32 %v407_v58  ;;  %v414_v60 = vsel %vm225_vm10, %v411_v59, 0.0 }
 0x2f9   :  { %415 = vadd.xlane.f32.xlu2 %v414_v60 }
 0x2fb   :  { %v401_v63 = vpop.xlane.xlu1 %400 }
 0x2fc   :  { %v404_v2 = vsub.f32 %v392_v48, %v401_v63 }
 0x2fe   :  { %v1171_v61 = vpop.eup %1170  ;;  %v409_v3 = vmul.f32 1.442695, %v404_v2 }
 0x2ff   :  { %v412_v29 = vsel %vm1492_vm12, %v1171_v61, 0.0  ;;  %v1146_v61 = vld [vmem:[%s1703_s7 + $0x8] sm:$0xff] }
 0x300   :  { %v417_v62 = vsel %vm225_vm10, %v412_v29, 0.0  ;;  %1172 = vpow2.f32 %v409_v3  ;;  %530 = vmatpush.bf16.msrb.mxu0 %v1146_v61 }
 0x301   :  { %418 = vadd.xlane.f32.xlu1 %v417_v62  ;;  %1174 = vpow2.f32 %v238_v5 }
 0x302   :  { %1176 = vpow2.f32 %v240_v9 }
 0x303   :  { %1178 = vpow2.f32 %v242_v16 }
 0x306   :  { %v1173_v6 = vpop.eup %1172 }
 0x307   :  { %v413_v8 = vsel %vm1474_vm6, %v1173_v6, 0.0  ;;  %v1175_v12 = vpop.eup %1174 }
 0x308   :  { %v420_v10 = vsel %vm225_vm10, %v413_v8, 0.0  ;;  %v1177_v18 = vpop.eup %1176 }
 0x309   :  { %v245_v19 = vsel %vm1492_vm12, %v1177_v18, 0.0  ;;  %v1179_v21 = vpop.eup %1178 }
 0x30a   :  { %v250_v20 = vsel %vm225_vm10, %v245_v19, 0.0  ;;  %v246_v22 = vsel %vm1474_vm6, %v1179_v21, 0.0  ;;  %v1165_v21 = vld [vmem:[%s1705_s9] ss:$0 sm:$0xff]  ;;  %s1307_s9 = smov 8  }
 0x30b   :  { %v253_v23 = vsel %vm225_vm10, %v246_v22, 0.0 }
 0x313   :  { %v443_v0 = vpop.permute.xlu1 %442 }
 0x314   :  { %458 = vmatpush.bf16.msra.mxu3 %v443_v0 }
 0x31a   :  { %440 = vrot.lane.b32.xlu1 %v1447_v30, %s1302_s1  ;;  %v244_v30 = vsel %vm1478_vm7, %v1175_v12, 0.0 }
 0x31b   :  { %v247_v17 = vsel %vm225_vm10, %v244_v30, 0.0 }
 0x344   :  { %421 = vadd.xlane.f32.xlu1 %v420_v10 }
 0x34c   :  { %248 = vadd.xlane.f32.xlu1 %v247_v17 }
 0x354   :  { %251 = vadd.xlane.f32.xlu1 %v250_v20  ;;  %v1164_v20 = vld [vmem:[%s1704_s8] ss:$0 sm:$0xff]  ;;  %s1306_s8 = smov 128  }
 0x35c   :  { %254 = vadd.xlane.f32.xlu1 %v253_v23 }
 0x36c   :  { %v416_v14 = vpop.xlane.xlu2 %415 }
 0x36d   :  { %v423_v24 = vmax.f32 %v416_v14, 1e-20 }
 0x36f   :  { %1180 = vrcp.f32 %v423_v24 }
 0x374   :  { %v419_v25 = vpop.xlane.xlu1 %418 }
 0x375   :  { %v1181_v26 = vpop.eup %1180  ;;  %v424_v28 = vmax.f32 %v419_v25, 1e-20 }
 0x376   :  { %v429_v31 = vmul.f32 %v1181_v26, %v411_v59 }
 0x377   :  { %1182 = vrcp.f32 %v424_v28 }
 0x378   :  { %433 = vst.msk [vmem:[#allocation2 + $0x18] sm:$0xff] %vm225_vm10, %v429_v31 }
 0x37d   :  { %v1183_v27 = vpop.eup %1182 }
 0x37e   :  { %v430_v32 = vmul.f32 %v1183_v27, %v412_v29  ;;  %v1145_v29 = vld [vmem:[%s1703_s7] sm:$0xff] }
 0x37f   :  { %531 = vmatpush.bf16.msrb.mxu0 %v1145_v29 }
 0x380   :  { %434 = vst.msk [vmem:[#allocation2 + $0x20] sm:$0xff] %vm225_vm10, %v430_v32  ;;  %v436_v13 = vpack.c.bf16 %v430_v32, %v429_v31 }
 0x38c   :  { %v441_v33 = vpop.permute.xlu1 %440 }
 0x38d   :  { %459 = vmatpush.bf16.msra.mxu3 %v441_v33 }
 0x390   :  { %1096 = vmatmul.msk.bf16.vlgmr.msra.gmra.mxu3 %vm225_vm10, %v436_v13 }
 0x3b7   :  { %v422_v34 = vpop.xlane.xlu1 %421 }
 0x3b8   :  { %v425_v35 = vmax.f32 %v422_v34, 1e-20 }
 0x3ba   :  { %1184 = vrcp.f32 %v425_v35 }
 0x3bf   :  { %v249_v36 = vpop.xlane.xlu1 %248 }
 0x3c0   :  { %v1185_v37 = vpop.eup %1184  ;;  %v256_v38 = vmax.f32 %v249_v36, 1e-20 }
 0x3c1   :  { %v431_v39 = vmul.f32 %v1185_v37, %v413_v8 }
 0x3c2   :  { %1186 = vrcp.f32 %v256_v38 }
 0x3c3   :  { %435 = vst.msk [vmem:[#allocation2 + $0x28] sm:$0xff] %vm225_vm10, %v431_v39  ;;  %v437_v40 = vpack.c.bf16 %v431_v39, %v431_v39 }
 0x3c5   :  { %1097 = vmatmul.msk.bf16.gmra.mxu3 %vm225_vm10, %v437_v40 }
 0x3c7   :  { %v252_v41 = vpop.xlane.xlu1 %251 }
 0x3c8   :  { %v1187_v42 = vpop.eup %1186  ;;  %v257_v43 = vmax.f32 %v252_v41, 1e-20 }
 0x3c9   :  { %v262_v44 = vmul.f32 %v1187_v42, %v244_v30 }
 0x3ca   :  { %1188 = vrcp.f32 %v257_v43 }
 0x3cb   :  { %265 = vst.msk [vmem:[#allocation2] sm:$0xff] %vm225_vm10, %v262_v44 }
 0x3cf   :  { %v255_v45 = vpop.xlane.xlu1 %254 }
 0x3d0   :  { %v1189_v46 = vpop.eup %1188  ;;  %v258_v47 = vmax.f32 %v255_v45, 1e-20 }
 0x3d1   :  { %v263_v48 = vmul.f32 %v1189_v46, %v245_v19 }
 0x3d2   :  { %1190 = vrcp.f32 %v258_v47 }
 0x3d3   :  { %266 = vst.msk [vmem:[#allocation2 + $0x8] sm:$0xff] %vm225_vm10, %v263_v48  ;;  %v268_v49 = vpack.c.bf16 %v263_v48, %v262_v44 }
 0x3d5   :  { %1094 = vmatmul.msk.bf16.vlgmr.msra.gmra.mxu2 %vm225_vm10, %v268_v49 }
 0x3d8   :  { %v1191_v50 = vpop.eup %1190 }
 0x3d9   :  { %v264_v51 = vmul.f32 %v1191_v50, %v246_v22 }
 0x3db   :  { %267 = vst.msk [vmem:[#allocation2 + $0x10] sm:$0xff] %vm225_vm10, %v264_v51  ;;  %v269_v52 = vpack.c.bf16 %v264_v51, %v264_v51 }
 0x3e5   :  { %1095 = vmatmul.msk.bf16.gmra.mxu2 %vm225_vm10, %v269_v52 }
 0x413   :  { %v461_v53 = vpop.f32.mrf.mxu3 }
 0x414   :  { %473 = vrot.lane.b32.xlu2 %v461_v53, %s1304_s3 }
 0x41b   :  { %v463_v54 = vpop.f32.mrf.mxu3 }
 0x41c   :  { %475 = vrot.lane.b32.xlu1 %v463_v54, %s1304_s3 }
 0x448   :  { %v466_v55 = vpop.f32.mrf.mxu3 }
 0x449   :  { %477 = vrot.lane.b32.xlu2 %v466_v55, %s1304_s3  ;;  %v544_v55 = vld [vmem:[%s1702_s6] sm:$0x3] }
 0x44a   :  { %vm546_vm5 = vnez %v544_v55 }
 0x450   :  { %v468_v56 = vpop.f32.mrf.mxu3 }
 0x451   :  { %v615_v56 = vsel %vm546_vm5, 16843009, %v1303_v1 }
 0x458   :  { %v287_v57 = vpop.f32.mrf.mxu2 }
 0x460   :  { %v289_v58 = vpop.f32.mrf.mxu2 }
 0x468   :  { %v292_v59 = vpop.f32.mrf.mxu2 }
 0x46e   :  { %v474_v62 = vpop.permute.xlu2 %473 }
 0x46f   :  { %v482_v63 = vsel %vm140_vm2, %v287_v57, %v474_v62 }
 0x470   :  { %v294_v60 = vpop.f32.mrf.mxu2  ;;  %v488_v0 = vmul.f32 1.442695, %v482_v63  ;;  %vm485_vm1 = vcmp.gt.f32.partialorder %v482_v63, 0.0 }
 0x472   :  { %1192 = vpow2.f32 %v488_v0 }
 0x478   :  { %v1193_v5 = vpop.eup %1192 }
 0x479   :  { %v1098_v6 = vadd.f32 -1.0, %v1193_v5 }
 0x47b   :  { %v1552_v9 = vsel %vm485_vm1, %v482_v63, %v1098_v6 }
 0x48e   :  { %v476_v2 = vpop.permute.xlu1 %475 }
 0x48f   :  { %v483_v3 = vsel %vm140_vm2, %v289_v58, %v476_v2 }
 0x490   :  { %v490_v4 = vmul.f32 1.442695, %v483_v3  ;;  %vm486_vm3 = vcmp.gt.f32.partialorder %v483_v3, 0.0 }
 0x492   :  { %1194 = vpow2.f32 %v490_v4 }
 0x498   :  { %v1195_v7 = vpop.eup %1194 }
 0x499   :  { %v1099_v8 = vadd.f32 -1.0, %v1195_v7 }
 0x49b   :  { %v1554_v10 = vsel %vm486_vm3, %v483_v3, %v1099_v8 }
 0x49c   :  { %v500_v11 = vpack.c.bf16 %v1554_v10, %v1552_v9 }
 0x49e   :  { %1109 = vmatmul.msk.bf16.vlgmr.msrb.gmra.mxu0 %vm225_vm10, %v500_v11  ;;  %v545_v11 = vld [vmem:[%s1702_s6 + $0x2] sm:$0x3]  ;;  %s1043_s6 = sshll.u32 %s1713_s17, 4  ;;  %s1044_s6 = int_to_ptr.hbm [resolvable:$true] %s1043_s6 }
 0x49f   :  { %vm547_vm9 = vnez %v545_v11 }
 0x4a3   :  { %v478_v12 = vpop.permute.xlu2 %477 }
 0x4a4   :  { %v484_v15 = vsel %vm140_vm2, %v292_v59, %v478_v12  ;;  %v617_v59 = vunpack.c.0.s8 %v615_v56 }
 0x4a5   :  { %v492_v30 = vmul.f32 1.442695, %v484_v15  ;;  %vm487_vm4 = vcmp.gt.f32.partialorder %v484_v15, 0.0 }
 0x4a6   :  { %vm1591_vm6 = vcmp.ne.s32.totalorder %v617_v59, 0 }
 0x4a7   :  { %1196 = vpow2.f32 %v492_v30 }
 0x4ad   :  { %v1197_v16 = vpop.eup %1196 }
 0x4ae   :  { %v1100_v17 = vadd.f32 -1.0, %v1197_v16  ;;  %v616_v16 = vsel %vm547_vm9, 16843009, %v1303_v1 }
 0x4b0   :  { %v499_v18 = vsel %vm487_vm4, %v484_v15, %v1100_v17  ;;  %vm947_vm4 = vcmask 31744  }
 0x4b1   :  { %v501_v19 = vpack.c.bf16 %v499_v18, %v499_v18 }
 0x4b3   :  { %1110 = vmatmul.msk.bf16.gmra.mxu0 %vm225_vm10, %v501_v19  ;;  %v618_v19 = vunpack.c.0.s8 %v616_v16  ;;  %v1150_v16 = vld [vmem:[%s1708_s12 + $0x8] sm:$0xff] }
 0x4b5   :  { %vm1606_vm12 = vcmp.ne.s32.totalorder %v618_v19, 0  ;;  %v1151_v19 = vld [vmem:[%s1711_s15] sm:$0xff] }
 0x51b   :  { %v533_v22 = vpop.f32.mrf.mxu0 }
 0x51c   :  { %v551_v23 = vmul.f32 %v1164_v20, %v533_v22  ;;  %v566_v14 = vmul.f32 %v1165_v21, %v533_v22 }
 0x51e   :  { %698 = vrot.lane.b32.xlu0 %v566_v14, %s1302_s1  ;;  %678 = vrot.lane.b32.xlu1 %v551_v23, %s1302_s1  ;;  %v568_v35 = vsel %vm140_vm2, %v566_v14, 0.0  ;;  %v554_v44 = vsel %vm140_vm2, %v551_v23, 0.0 }
 0x523   :  { %v535_v24 = vpop.f32.mrf.mxu0 }
 0x524   :  { %v552_v25 = vmul.f32 %v1164_v20, %v535_v24  ;;  %v567_v26 = vmul.f32 %v1165_v21, %v535_v24  ;;  %v1573_v33 = vpack.c.bf16 %v535_v24, %v533_v22 }
 0x526   :  { %680 = vrot.lane.b32.xlu2 %v552_v25, %s1302_s1  ;;  %v557_v34 = vsel %vm140_vm2, %v552_v25, 0.0  ;;  %v571_v48 = vsel %vm140_vm2, %v567_v26, 0.0 }
 0x52e   :  { %700 = vrot.lane.b32.xlu2 %v567_v26, %s1302_s1 }
 0x530   :  { %v538_v28 = vpop.f32.mrf.mxu0 }
 0x531   :  { %v553_v31 = vmul.f32 %v1164_v20, %v538_v28  ;;  %v654_v27 = vpack.c.bf16 %v538_v28, %v538_v28 }
 0x533   :  { %682 = vrot.lane.b32.xlu1 %v553_v31, %s1302_s1  ;;  %v659_v32 = vsel %vm76_vm0, %v654_v27, 0  ;;  %v560_v47 = vsel %vm140_vm2, %v553_v31, 0.0 }
 0x534   :  { %667 = vmatpush.bf16.msrb.mxu1 %v659_v32 }
 0x538   :  { %v540_v13 = vpop.f32.mrf.mxu0  ;;  %668 = vmatpush.bf16.msrb.mxu1 %v1573_v33 }
 0x53c   :  { %902 = vmatpush.bf16.msra.mxu1 %v1150_v16 }
 0x548   :  { %558 = vadd.xlane.f32.xlu0 %v557_v34 }
 0x550   :  { %569 = vadd.xlane.f32.xlu0 %v568_v35 }
 0x580   :  { %v681_v36 = vpop.permute.xlu2 %680 }
 0x581   :  { %v690_v37 = vsel %vm140_vm2, %v681_v36, 0.0 }
 0x582   :  { %691 = vadd.xlane.f32.xlu2 %v690_v37 }
 0x588   :  { %v701_v38 = vpop.permute.xlu2 %700 }
 0x589   :  { %v707_v39 = vsel %vm140_vm2, %v701_v38, 0.0 }
 0x58a   :  { %708 = vadd.xlane.f32.xlu2 %v707_v39 }
 0x590   :  { %v679_v40 = vpop.permute.xlu1 %678  ;;  %v699_v42 = vpop.permute.xlu0 %698 }
 0x591   :  { %v687_v41 = vsel %vm140_vm2, %v679_v40, 0.0  ;;  %v704_v43 = vsel %vm140_vm2, %v699_v42, 0.0 }
 0x592   :  { %688 = vadd.xlane.f32.xlu1 %v687_v41 }
 0x59a   :  { %705 = vadd.xlane.f32.xlu1 %v704_v43 }
 0x5a2   :  { %555 = vadd.xlane.f32.xlu1 %v554_v44 }
 0x5a5   :  { %v683_v45 = vpop.permute.xlu1 %682 }
 0x5a6   :  { %v693_v46 = vsel %vm140_vm2, %v683_v45, 0.0 }
 0x5a7   :  { %694 = vadd.xlane.f32.xlu0 %v693_v46 }
 0x5aa   :  { %561 = vadd.xlane.f32.xlu1 %v560_v47 }
 0x5b2   :  { %572 = vadd.xlane.f32.xlu1 %v571_v48 }
 0x5bb   :  { %v559_v50 = vpop.xlane.xlu0 %558 }
 0x5c3   :  { %v570_v52 = vpop.xlane.xlu0 %569 }
 0x5f5   :  { %v692_v51 = vpop.xlane.xlu2 %691 }
 0x5fd   :  { %v709_v54 = vpop.xlane.xlu2 %708 }
 0x605   :  { %v689_v49 = vpop.xlane.xlu1 %688 }
 0x606   :  { %710 = vxpose.xlu2.b32.start [1/3] (short) (narrow) %v689_v49, 8 }
 0x60d   :  { %v706_v60 = vpop.xlane.xlu1 %705 }
 0x60e   :  { %711 = vxpose.xlu2.b32.cont [2/3] (short) (narrow) %v692_v51, 8 }
 0x615   :  { %v556_v4 = vpop.xlane.xlu1 %555 }
 0x61a   :  { %v695_v53 = vpop.xlane.xlu0 %694 }
 0x61b   :  { %712 = vxpose.xlu2.b32.end [3/3] (short) (narrow) %v695_v53, 8 }
 0x61d   :  { %v562_v7 = vpop.xlane.xlu1 %561 }
 0x625   :  { %v573_v23 = vpop.xlane.xlu1 %572 }
 0x684   :  { %787 = vrot.lane.b32.xlu2 %v654_v27, %s1302_s1 }
 0x6a4   :  { %v726_v57 = vpop.trf.xlu2 }
 0x6a5   :  { %v742_v58 = vperm.slane %v726_v57, 0 }
 0x6a7   :  { %v743_v61 = vadd.f32 %v742_v58, %v706_v60  ;;  %v744_v29 = vadd.f32 %v742_v58, %v709_v54 }
 0x6a9   :  { %vm745_vm7 = vcmp.gt.f32.partialorder %v743_v61, 0.0  ;;  %v747_v63 = vmul.f32 0.2, %v743_v61  ;;  %v748_v20 = vmul.f32 0.2, %v744_v29 }
 0x6ab   :  { %v749_v0 = vsel %vm745_vm7, %v743_v61, %v747_v63 }
 0x6ac   :  { %v751_v2 = vsel %vm1591_vm6, %v749_v0, -1e+30 }
 0x6ad   :  { %v753_v3 = vsel %vm623_vm8, %v751_v2, -inf }
 0x6ae   :  { %754 = vmax.xlane.f32.xlu0 %v753_v3 }
 0x6d7   :  { %574 = vxpose.xlu0.b32.start [1/3] (short) (narrow) %v556_v4, 8 }
 0x6de   :  { %v788_v5 = vpop.permute.xlu2 %787 }
 0x6df   :  { %575 = vxpose.xlu0.b32.cont [2/3] (short) (narrow) %v559_v50, 8  ;;  %v794_v6 = vsel %vm76_vm0, %v788_v5, 0  ;;  %vm746_vm0 = vcmp.gt.f32.partialorder %v744_v29, 0.0 }
 0x6e0   :  { %802 = vmatpush.bf16.msrb.mxu2 %v794_v6  ;;  %v750_v25 = vsel %vm746_vm0, %v744_v29, %v748_v20 }
 0x6e1   :  { %v752_v28 = vsel %vm1606_vm12, %v750_v25, -1e+30 }
 0x6e2   :  { %v756_v32 = vsel %vm623_vm8, %v752_v28, -inf }
 0x6e7   :  { %576 = vxpose.xlu0.b32.end [3/3] (short) (narrow) %v562_v7, 8 }
 0x721   :  { %v755_v8 = vpop.xlane.xlu0 %754 }
 0x722   :  { %v759_v26 = vsub.f32 %v751_v2, %v755_v8 }
 0x724   :  { %v761_v27 = vmul.f32 1.442695, %v759_v26 }
 0x726   :  { %1198 = vpow2.f32 %v761_v27 }
 0x72c   :  { %v1199_v36 = vpop.eup %1198 }
 0x72d   :  { %v765_v37 = vsel %vm1591_vm6, %v1199_v36, 0.0 }
 0x72e   :  { %v767_v38 = vsel %vm623_vm8, %v765_v37, 0.0 }
 0x77b   :  { %v590_v12 = vpop.trf.xlu0 }
 0x77c   :  { %v606_v15 = vperm.slane %v590_v12, 0 }
 0x77e   :  { %v607_v30 = vadd.f32 %v606_v15, %v570_v52  ;;  %v608_v14 = vadd.f32 %v606_v15, %v573_v23 }
 0x780   :  { %vm609_vm11 = vcmp.gt.f32.partialorder %v607_v30, 0.0  ;;  %v611_v17 = vmul.f32 0.2, %v607_v30  ;;  %v612_v31 = vmul.f32 0.2, %v608_v14  ;;  %vm610_vm13 = vcmp.gt.f32.partialorder %v608_v14, 0.0 }
 0x782   :  { %v613_v18 = vsel %vm609_vm11, %v607_v30, %v611_v17  ;;  %v614_v13 = vsel %vm610_vm13, %v608_v14, %v612_v31  ;;  %v1152_v17 = vld [vmem:[%s1711_s15 + $0x8] sm:$0xff]  ;;  %v1147_v14 = vld [vmem:[%s1707_s11] sm:$0xff] }
 0x783   :  { %v621_v21 = vsel %vm1591_vm6, %v613_v18, -1e+30  ;;  %v622_v34 = vsel %vm1606_vm12, %v614_v13, -1e+30  ;;  %v1149_v18 = vld [vmem:[%s1708_s12] sm:$0xff] }
 0x784   :  { %v624_v22 = vsel %vm623_vm8, %v621_v21, -inf  ;;  %v627_v35 = vsel %vm623_vm8, %v622_v34, -inf  ;;  %903 = vmatpush.bf16.msra.mxu1 %v1149_v18 }
 0x785   :  { %625 = vmax.xlane.f32.xlu1 %v624_v22 }
 0x78d   :  { %757 = vmax.xlane.f32.xlu1 %v756_v32 }
 0x795   :  { %628 = vmax.xlane.f32.xlu1 %v627_v35 }
 0x79d   :  { %768 = vadd.xlane.f32.xlu1 %v767_v38 }
 0x7f8   :  { %v626_v39 = vpop.xlane.xlu1 %625 }
 0x7f9   :  { %v630_v40 = vsub.f32 %v621_v21, %v626_v39  ;;  %v1148_v21 = vld [vmem:[%s1707_s11 + $0x8] sm:$0xff] }
 0x7fa   :  { %868 = vmatpush.bf16.msrb.mxu3 %v1148_v21 }
 0x7fb   :  { %v632_v41 = vmul.f32 1.442695, %v630_v40 }
 0x7fd   :  { %1200 = vpow2.f32 %v632_v41 }
 0x7fe   :  { %869 = vmatpush.bf16.msrb.mxu3 %v1147_v14 }
 0x800   :  { %v758_v42 = vpop.xlane.xlu1 %757 }
 0x801   :  { %v760_v43 = vsub.f32 %v752_v28, %v758_v42 }
 0x803   :  { %v1201_v44 = vpop.eup %1200  ;;  %v763_v45 = vmul.f32 1.442695, %v760_v43 }
 0x804   :  { %v636_v46 = vsel %vm1591_vm6, %v1201_v44, 0.0 }
 0x805   :  { %1202 = vpow2.f32 %v763_v45  ;;  %v638_v47 = vsel %vm623_vm8, %v636_v46, 0.0 }
 0x806   :  { %639 = vadd.xlane.f32.xlu0 %v638_v47  ;;  %v1166_v47 = vld [vmem:[%s1710_s14] ss:$0 sm:$0xff] }
 0x808   :  { %v629_v48 = vpop.xlane.xlu1 %628 }
 0x809   :  { %v631_v56 = vsub.f32 %v622_v34, %v629_v48 }
 0x80b   :  { %v1203_v49 = vpop.eup %1202  ;;  %v634_v57 = vmul.f32 1.442695, %v631_v56 }
 0x80c   :  { %v766_v50 = vsel %vm1606_vm12, %v1203_v49, 0.0 }
 0x80d   :  { %v770_v51 = vsel %vm623_vm8, %v766_v50, 0.0 }
 0x80e   :  { %771 = vadd.xlane.f32.xlu1 %v770_v51 }
 0x810   :  { %v769_v52 = vpop.xlane.xlu1 %768 }
 0x811   :  { %v773_v53 = vmax.f32 %v769_v52, 1e-20 }
 0x813   :  { %1204 = vrcp.f32 %v773_v53  ;;  %v1167_v53 = vld [vmem:[%s1709_s13] ss:$0 sm:$0xff] }
 0x814   :  { %1206 = vpow2.f32 %v634_v57 }
 0x819   :  { %v1205_v54 = vpop.eup %1204 }
 0x81a   :  { %v777_v55 = vmul.f32 %v1205_v54, %v765_v37  ;;  %v1207_v58 = vpop.eup %1206 }
 0x81b   :  { %v637_v59 = vsel %vm1606_vm12, %v1207_v58, 0.0 }
 0x81c   :  { %780 = vst.msk [vmem:[#allocation4 + $0x10] sm:$0xff] %vm623_vm8, %v777_v55  ;;  %v641_v60 = vsel %vm623_vm8, %v637_v59, 0.0 }
 0x827   :  { %785 = vrot.lane.b32.xlu1 %v1573_v33, %s1302_s1  ;;  %s1308_s1 = smov [#allocation2]  }
 0x828   :  { %s1041_s5 = sshll.u32 %s1308_s1, 4  ;;  %s1042_s5 = int_to_ptr.vmem [resolvable:$true] %s1041_s5 }
 0x829   :  { %1049 = dma.vmem_to_hbm [thread:$0]  %s1042_s5, 768, %s1044_s6, [#allocation3], %s1306_s8, %s1306_s8, %s1307_s9  }
 0x851   :  { %642 = vadd.xlane.f32.xlu1 %v641_v60 }
 0x879   :  { %v640_v61 = vpop.xlane.xlu0 %639 }
 0x87a   :  { %v644_v29 = vmax.f32 %v640_v61, 1e-20 }
 0x87c   :  { %1208 = vrcp.f32 %v644_v29 }
 0x881   :  { %v772_v62 = vpop.xlane.xlu1 %771 }
 0x882   :  { %v1209_v63 = vpop.eup %1208  ;;  %v774_v0 = vmax.f32 %v772_v62, 1e-20 }
 0x883   :  { %v648_v2 = vmul.f32 %v1209_v63, %v636_v46  ;;  %v911_v63 = vld [vmem:[%s1706_s10] sm:$0x3]  ;;  %s1305_s10 = smov [#allocation4]  }
 0x884   :  { %1210 = vrcp.f32 %v774_v0  ;;  %s1054_s13 = sshll.u32 %s1305_s10, 4  ;;  %s1055_s13 = int_to_ptr.vmem [resolvable:$true] %s1054_s13 }
 0x885   :  { %650 = vst.msk [vmem:[#allocation4] sm:$0xff] %vm623_vm8, %v648_v2 }
 0x88a   :  { %v1211_v33 = vpop.eup %1210 }
 0x88b   :  { %v778_v3 = vmul.f32 %v1211_v33, %v766_v50 }
 0x88d   :  { %781 = vst.msk [vmem:[#allocation4 + $0x18] sm:$0xff] %vm623_vm8, %v778_v3  ;;  %v782_v5 = vpack.c.bf16 %v778_v3, %v777_v55 }
 0x899   :  { %v786_v4 = vpop.permute.xlu1 %785 }
 0x89a   :  { %803 = vmatpush.bf16.msrb.mxu2 %v786_v4 }
 0x89d   :  { %1112 = vmatmul.msk.bf16.vlgmr.msrb.gmra.mxu2 %vm623_vm8, %v782_v5 }
 0x89e   :  { %935 = vmatpush.bf16.msra.mxu2 %v1152_v17 }
 0x8a2   :  { %936 = vmatpush.bf16.msra.mxu2 %v1151_v19 }
 0x8c4   :  { %v643_v6 = vpop.xlane.xlu1 %642 }
 0x8c5   :  { %v645_v7 = vmax.f32 %v643_v6, 1e-20 }
 0x8c7   :  { %1212 = vrcp.f32 %v645_v7 }
 0x8cd   :  { %v1213_v8 = vpop.eup %1212 }
 0x8ce   :  { %v649_v11 = vmul.f32 %v1213_v8, %v637_v59 }
 0x8d0   :  { %651 = vst.msk [vmem:[#allocation4 + $0x8] sm:$0xff] %vm623_vm8, %v649_v11  ;;  %v652_v12 = vpack.c.bf16 %v649_v11, %v648_v2 }
 0x8d1   :  { %1062 = dma.vmem_to_hbm [thread:$0]  %s1055_s13, 512, %s1057_s20, [#allocation5], %s1306_s8, %s1306_s8, %s1307_s9  }
 0x8d2   :  { %1111 = vmatmul.msk.bf16.vlgmr.msrb.gmra.mxu1 %vm623_vm8, %v652_v12 }
 0x920   :  { %v805_v15 = vpop.f32.mrf.mxu2 }
 0x921   :  { %812 = vrot.lane.b32.xlu1 %v805_v15, %s1304_s3 }
 0x928   :  { %v807_v30 = vpop.f32.mrf.mxu2 }
 0x929   :  { %814 = vrot.lane.b32.xlu1 %v807_v30, %s1304_s3 }
 0x94f   :  { %v670_v20 = vpop.f32.mrf.mxu1 }
 0x957   :  { %v672_v26 = vpop.f32.mrf.mxu1 }
 0x993   :  { %v813_v22 = vpop.permute.xlu1 %812 }
 0x994   :  { %v818_v23 = vsel %vm140_vm2, %v670_v20, %v813_v22 }
 0x995   :  { %v820_v24 = vadd.f32 %v818_v23, %v1552_v9 }
 0x997   :  { %v824_v25 = vmul.f32 1.442695, %v820_v24  ;;  %vm822_vm14 = vcmp.gt.f32.partialorder %v820_v24, 0.0 }
 0x999   :  { %1214 = vpow2.f32 %v824_v25 }
 0x99b   :  { %v815_v28 = vpop.permute.xlu1 %814 }
 0x99c   :  { %v819_v31 = vsel %vm140_vm2, %v672_v26, %v815_v28 }
 0x99d   :  { %v821_v27 = vadd.f32 %v819_v31, %v1554_v10 }
 0x99f   :  { %v1215_v32 = vpop.eup %1214  ;;  %v826_v13 = vmul.f32 1.442695, %v821_v27  ;;  %vm823_vm15 = vcmp.gt.f32.partialorder %v821_v27, 0.0 }
 0x9a0   :  { %v1113_v34 = vadd.f32 -1.0, %v1215_v32 }
 0x9a1   :  { %1216 = vpow2.f32 %v826_v13 }
 0x9a2   :  { %v830_v35 = vsel %vm822_vm14, %v820_v24, %v1113_v34 }
 0x9a3   :  { %v834_v36 = vmul.f32 1.442695, %v830_v35  ;;  %vm832_vm1 = vcmp.gt.f32.partialorder %v830_v35, 0.0 }
 0x9a5   :  { %1218 = vpow2.f32 %v834_v36 }
 0x9a7   :  { %v1217_v37 = vpop.eup %1216 }
 0x9a8   :  { %v1114_v38 = vadd.f32 -1.0, %v1217_v37 }
 0x9aa   :  { %v831_v9 = vsel %vm823_vm15, %v821_v27, %v1114_v38 }
 0x9ab   :  { %v1219_v39 = vpop.eup %1218  ;;  %v836_v40 = vmul.f32 1.442695, %v831_v9  ;;  %vm833_vm3 = vcmp.gt.f32.partialorder %v831_v9, 0.0 }
 0x9ac   :  { %v1115_v41 = vadd.f32 -1.0, %v1219_v39 }
 0x9ad   :  { %1220 = vpow2.f32 %v836_v40 }
 0x9ae   :  { %v840_v42 = vsel %vm832_vm1, %v830_v35, %v1115_v41 }
 0x9af   :  { %v876_v43 = vpack.c.bf16 %v840_v42, %v840_v42 }
 0x9b1   :  { %1134 = vmatmul.msk.bf16.vlgmr.msra.gmra.mxu1 %vm225_vm10, %v876_v43  ;;  %1143 = vmatmul.msk.bf16.vlgmr.msra.gmra.mxu2 %vm225_vm10, %v876_v43 }
 0x9b3   :  { %v1221_v10 = vpop.eup %1220 }
 0x9b4   :  { %v1116_v44 = vadd.f32 -1.0, %v1221_v10 }
 0x9b6   :  { %v841_v45 = vsel %vm833_vm3, %v831_v9, %v1116_v44 }
 0x9b7   :  { %v842_v46 = vpack.c.bf16 %v841_v45, %v840_v42 }
 0x9b9   :  { %1125 = vmatmul.msk.bf16.vlgmr.msrb.gmra.mxu3 %vm225_vm10, %v842_v46  ;;  %vm912_vm10 = vnez %v911_v63 }
 0x9ba   :  { %v998_v0 = vsel %vm912_vm10, 16843009, %v1303_v1 }
 0x9bb   :  { %v999_v3 = vunpack.c.0.s8 %v998_v0 }
 0x9bd   :  { %vm1000_vm6 = vcmp.ne.s32.totalorder %v999_v3, 0 }
 0xa2e   :  { %v905_v48 = vpop.f32.mrf.mxu1 }
 0xa2f   :  { %v957_v49 = vmul.f32 %v1166_v47, %v905_v48 }
 0xa31   :  { %v958_v50 = vsel %vm947_vm4, %v957_v49, 0.0 }
 0xa32   :  { %959 = vadd.xlane.f32.xlu0 %v958_v50 }
 0xa34   :  { %v1667_v51 = vpop.f32.mrf.mxu2 }
 0xa36   :  { %v907_v52 = vpop.f32.mrf.mxu1 }
 0xa3c   :  { %v871_v54 = vpop.f32.mrf.mxu3  ;;  %v940_v55 = vpop.f32.mrf.mxu2 }
 0xa3d   :  { %v945_v56 = vmul.f32 %v1167_v53, %v871_v54 }
 0xa3f   :  { %v948_v57 = vsel %vm947_vm4, %v945_v56, 0.0 }
 0xa40   :  { %949 = vadd.xlane.f32.xlu1 %v948_v57 }
 0xa44   :  { %v873_v58 = vpop.f32.mrf.mxu3 }
 0xa45   :  { %v946_v59 = vmul.f32 %v1167_v53, %v873_v58  ;;  %v1017_v60 = vpack.c.bf16 %v873_v58, %v871_v54 }
 0xa47   :  { %1028 = vmatpush.bf16.msra.mxu3 %v1017_v60  ;;  %v951_v61 = vsel %vm947_vm4, %v946_v59, 0.0 }
 0xa48   :  { %952 = vadd.xlane.f32.xlu2 %v951_v61 }
 0xaa5   :  { %v960_v4 = vpop.xlane.xlu0 %959 }
 0xab3   :  { %v950_v29 = vpop.xlane.xlu1 %949 }
 0xab4   :  { %961 = vxpose.xlu1.b32.start [1/2] (short) (narrow) %v950_v29, 8 }
 0xabb   :  { %v953_v62 = vpop.xlane.xlu2 %952 }
 0xabc   :  { %962 = vxpose.xlu1.b32.end [2/2] (short) (narrow) %v953_v62, 8 }
 0xb58   :  { %v977_v2 = vpop.trf.xlu1 }
 0xb59   :  { %v993_v33 = vperm.slane %v977_v2, 0 }
 0xb5b   :  { %v994_v5 = vadd.f32 %v993_v33, %v960_v4 }
 0xb5d   :  { %v996_v6 = vmul.f32 0.2, %v994_v5  ;;  %vm995_vm5 = vcmp.gt.f32.partialorder %v994_v5, 0.0 }
 0xb5f   :  { %v997_v7 = vsel %vm995_vm5, %v994_v5, %v996_v6 }
 0xb60   :  { %v1001_v8 = vsel %vm1000_vm6, %v997_v7, -1e+30 }
 0xb61   :  { %v1002_v11 = vsel %vm140_vm2, %v1001_v8, -inf }
 0xb62   :  { %1003 = vmax.xlane.f32.xlu2 %v1002_v11 }
 0xbd5   :  { %v1004_v12 = vpop.xlane.xlu2 %1003 }
 0xbd6   :  { %v1005_v15 = vsub.f32 %v1001_v8, %v1004_v12 }
 0xbd8   :  { %v1006_v30 = vmul.f32 1.442695, %v1005_v15 }
 0xbda   :  { %1222 = vpow2.f32 %v1006_v30 }
 0xbe0   :  { %v1223_v16 = vpop.eup %1222 }
 0xbe1   :  { %v1008_v17 = vsel %vm1000_vm6, %v1223_v16, 0.0 }
 0xbe2   :  { %v1009_v1 = vsel %vm140_vm2, %v1008_v17, 0.0 }
 0xbe3   :  { %1010 = vadd.xlane.f32.xlu0 %v1009_v1 }
 0xc56   :  { %v1011_v18 = vpop.xlane.xlu0 %1010 }
 0xc57   :  { %v1012_v19 = vmax.f32 %v1011_v18, 1e-20 }
 0xc59   :  { %1224 = vrcp.f32 %v1012_v19 }
 0xc5f   :  { %v1225_v20 = vpop.eup %1224 }
 0xc60   :  { %v1014_v21 = vmul.f32 %v1225_v20, %v1008_v17 }
 0xc62   :  { %v1016_v22 = vpack.c.bf16 %v1014_v21, %v1014_v21  ;;  %1015 = vst.msk [vmem:[#allocation6] sm:$0xff] %vm140_vm2, %v1014_v21 }
 0xc63   :  { %1073 = dma.vmem_to_hbm [thread:$0]  %s1069_s2, 128, %s1071_s18, [#allocation5]  }
 0xc64   :  { %1144 = vmatmul.msk.bf16.vlgmr.msra.gmra.mxu3 %vm140_vm2, %v1016_v22 }
 0xce7   :  { %v1030_v23 = vpop.f32.mrf.mxu3 }
 0xce8   :  { %v1031_v14 = vadd.f32 %v1030_v23, %v1667_v51 }
 0xcea   :  { %1034 = vst.msk [vmem:[%s1712_s16] sm:$0xff] %vm947_vm4, %v1031_v14 }
 0xcef   :  { %v1032_v24 = vpop.f32.mrf.mxu3 }
 0xcf0   :  { %1298 = dma.done.wait [#allocation3], 768  }
 0xcf1   :  { %1299 = vsyncadd [#allocation3], 4294966528 }
 0xcf2   :  { %1300 = dma.done.wait [#allocation5], 640  }
 0xcf3   :  { %1301 = vsyncadd [#allocation5], 4294966656 }
 0xcf4   :  { %1088 = vsyncpa [#allocation3], 1 }
 0xcf5   :  { %1089 = vsyncpa [#allocation5], 1 }

</bundles_post_ra>
